<compile_context>
chip_gen: v7x
topology: tpu7x:2x2x1
jax: 0.10.0
libtpu: 0.0.40
codegen_flags: <defaults>
</compile_context>

<pallas_src>
import functools

import numpy as np

import jax
import jax.numpy as jnp
from jax import lax
from jax.experimental import pallas as pl
from jax.experimental.pallas import tpu as pltpu


_BN_EPS = 1e-5


# ---------------------------------------------------------------------------
# Host-side helpers
# ---------------------------------------------------------------------------
def _tap_masks(h, w, d):
    """(9, h*w) f32 validity masks for the 9 taps of a dilation-d 3x3 conv.

    Row t (t = 3*i + j, i,j in {0,1,2}, (dy,dx) = ((i-1)d, (j-1)d)) is 1.0 at
    output position p = y*w + x iff the tapped input pixel (y+dy, x+dx) lies
    inside the image (i.e. the tap does not fall into the zero padding).
    """
    yy, xx = np.meshgrid(np.arange(h), np.arange(w), indexing="ij")
    rows = []
    for dy in (-d, 0, d):
        for dx in (-d, 0, d):
            m = ((yy + dy >= 0) & (yy + dy < h) &
                 (xx + dx >= 0) & (xx + dx < w))
            rows.append(m.reshape(h * w))
    return np.stack(rows).astype(np.float32)


# ---------------------------------------------------------------------------
# Fused Block kernel (one image per grid step)
# ---------------------------------------------------------------------------
def _block_kernel(*refs, convs, relu_flags, mask_row0, w, hw, has_skip):
    """Fused Block forward on one image, lane-dense (C, H*W) layout.

    refs (in order):
      x_ref      : (1, Cin, HW)          input image (flattened spatial)
      masks_ref  : (9*n_dil, HW)         precomputed tap validity masks
      per conv l : dw_ref (Ci, 9), pw_ref (Co, Ci), sc_ref (Co, 1),
                   sh_ref (Co, 1)        depthwise / pointwise / folded-BN
      [skip]     : skw_ref (Cout, Cin), sksc_ref (Cout, 1), sksh_ref (Cout, 1)
      o_ref      : (1, Cout, HW)         output
    """
    x_ref = refs[0]
    masks_ref = refs[1]
    idx = 2
    conv_refs = []
    for _ in convs:
        conv_refs.append(refs[idx:idx + 4])
        idx += 4
    if has_skip:
        skw_ref, sksc_ref, sksh_ref = refs[idx:idx + 3]
        idx += 3
    o_ref = refs[idx]

    x0 = x_ref[0]                       # (Cin, HW) lane-dense slab
    cur = x0
    for l, (ci, co, d) in enumerate(convs):
        dw_ref, pw_ref, sc_ref, sh_ref = conv_refs[l]
        row0 = mask_row0[l]

        # Depthwise 3x3 (dilated) conv: each tap is a lane roll of the flat
        # slab + a precomputed boundary mask; vectorised over all channels.
        acc = jnp.zeros((ci, hw), jnp.float32)
        t = 0
        for dy in (-d, 0, d):
            for dx in (-d, 0, d):
                if dy == 0 and dx == 0:
                    contrib = cur
                else:
                    shift = (-(dy * w + dx)) % hw
                    rolled = pltpu.roll(cur, shift, axis=1)
                    contrib = rolled * masks_ref[row0 + t:row0 + t + 1, :]
                acc = acc + dw_ref[:, t:t + 1] * contrib
                t += 1

        # Pointwise 1x1 conv: exact f32 VPU MAC (tiny channel counts).
        # TODO(synk): MXU matmul path for production channel counts.
        y = jnp.zeros((co, hw), jnp.float32)
        for c in range(ci):
            y = y + pw_ref[:, c:c + 1] * acc[c:c + 1, :]

        # Folded (inference-mode) BatchNorm + optional ReLU.
        y = y * sc_ref[...] + sh_ref[...]
        if relu_flags[l]:
            y = jnp.maximum(y, 0.0)
        cur = y

    # Skip branch (1x1 conv + folded BN) or identity, then residual + ReLU.
    if has_skip:
        sk = jnp.zeros_like(cur)
        for c in range(x0.shape[0]):
            sk = sk + skw_ref[:, c:c + 1] * x0[c:c + 1, :]
        sk = sk * sksc_ref[...] + sksh_ref[...]
    else:
        sk = x0
    o_ref[0] = jnp.maximum(sk + cur, 0.0)


# ---------------------------------------------------------------------------
# Wrapper: one pallas_call per Block forward
# ---------------------------------------------------------------------------
def block_forward(x, params, stride):
    """Pallas forward of Block.  x: (N, Cin, H, W) float32 (NCHW)."""
    if stride != 1:
        # TODO(synk): apply the output stride inside the kernel (strided
        #             final-conv accumulation + strided skip read); the
        #             instantiated config uses stride=1.
        raise NotImplementedError("fused Block kernel supports stride=1 only")

    n, cin, h, w = x.shape
    hw = h * w
    seps = params["seps"]
    skip = params["skip"]

    convs, relu_flags, conv_args, dils = [], [], [], []
    for dw, pw, scale, shift, relu, dil, _st in seps:
        ci, co = dw.shape[0], pw.shape[0]
        convs.append((ci, co, int(dil)))
        relu_flags.append(bool(relu))
        dils.append(int(dil))
        conv_args += [
            jnp.asarray(dw, jnp.float32).reshape(ci, 9),
            jnp.asarray(pw, jnp.float32),
            jnp.asarray(scale, jnp.float32).reshape(co, 1),
            jnp.asarray(shift, jnp.float32).reshape(co, 1),
        ]
    cout = convs[-1][1]

    uniq = sorted(set(dils))
    masks = jnp.asarray(np.concatenate([_tap_masks(h, w, d) for d in uniq], 0))
    row_of = {d: 9 * i for i, d in enumerate(uniq)}
    mask_row0 = tuple(row_of[d] for d in dils)

    has_skip = skip is not None
    skip_args = []
    if has_skip:
        sw, sscale, sshift = skip
        skip_args = [jnp.asarray(sw, jnp.float32),
                     jnp.asarray(sscale, jnp.float32).reshape(cout, 1),
                     jnp.asarray(sshift, jnp.float32).reshape(cout, 1)]

    x_flat = x.reshape(n, cin, hw)      # lane-dense: spatial on the last axis

    def _full(a):
        nd = a.ndim
        return pl.BlockSpec(a.shape, lambda i, _nd=nd: (0,) * _nd)

    in_specs = ([pl.BlockSpec((1, cin, hw), lambda i: (i, 0, 0)),
                 _full(masks)]
                + [_full(a) for a in conv_args]
                + [_full(a) for a in skip_args])

    kernel = functools.partial(
        _block_kernel, convs=tuple(convs), relu_flags=tuple(relu_flags),
        mask_row0=mask_row0, w=w, hw=hw, has_skip=has_skip)

    flops = 0
    for ci, co, _d in convs:
        flops += n * hw * (18 * ci + 2 * ci * co + 2 * co)
    if has_skip:
        flops += n * hw * (2 * cin * cout + 2 * cout)
    flops += n * hw * 2 * cout
    bytes_accessed = 4 * (int(x_flat.size) + n * cout * hw + int(masks.size)
                          + sum(int(a.size) for a in conv_args)
                          + sum(int(a.size) for a in skip_args))

    out_flat = pl.pallas_call(
        kernel,
        grid=(n,),
        in_specs=in_specs,
        out_specs=pl.BlockSpec((1, cout, hw), lambda i: (i, 0, 0)),
        out_shape=jax.ShapeDtypeStruct((n, cout, hw), jnp.float32),
        compiler_params=pltpu.CompilerParams(
            dimension_semantics=("parallel",)),
        cost_estimate=pl.CostEstimate(flops=flops, transcendentals=0,
                                      bytes_accessed=bytes_accessed),
    )(x_flat, masks, *conv_args, *skip_args)
    return out_flat.reshape(n, cout, h, w)


# ---------------------------------------------------------------------------
# Parameter construction (deterministic, synthetic)
# ---------------------------------------------------------------------------
def _bn_fold(key, c):
    k1, k2, k3, k4 = jax.random.split(key, 4)
    gamma = jax.random.uniform(k1, (c,), minval=0.5, maxval=1.5)
    beta = jax.random.normal(k2, (c,)) * 0.1
    mean = jax.random.normal(k3, (c,)) * 0.1
    var = jax.random.uniform(k4, (c,), minval=0.5, maxval=1.5)
    scale = gamma / jnp.sqrt(var + _BN_EPS)
    shift = beta - mean * scale
    return scale, shift


def init_block_params(key, in_ch, out_ch, reps, stride, dilation,
                      grow_first=True):
    # each sep entry: (dw_w, pw_w, scale, shift, relu, dilation, stride)
    if grow_first:
        dims = [(in_ch, out_ch)] + [(out_ch, out_ch)] * (reps - 1)
    else:
        dims = [(in_ch, in_ch)] + [(in_ch, out_ch)] * (reps - 1)

    seps = []
    for ci, co in dims:
        key, k1, k2, kb = jax.random.split(key, 4)
        dw = jax.random.normal(k1, (ci, 3, 3)) * 0.2
        pw = jax.random.normal(k2, (co, ci)) * 0.2
        scale, shift = _bn_fold(kb, co)
        seps.append((dw, pw, scale, shift, True, dilation, 1))

    # final SeparabelConv2d(out, out, 3, stride=stride) -> no BN, no ReLU
    key, k1, k2 = jax.random.split(key, 3)
    co = out_ch
    dw = jax.random.normal(k1, (co, 3, 3)) * 0.2
    pw = jax.random.normal(k2, (co, co)) * 0.2
    seps.append((dw, pw, jnp.ones((co,)), jnp.zeros((co,)), False, 1, stride))

    skip = None
    if in_ch != out_ch or stride != 1:
        key, k1, kb = jax.random.split(key, 3)
        sw = jax.random.normal(k1, (out_ch, in_ch)) * 0.2
        sscale, sshift = _bn_fold(kb, out_ch)
        skip = (sw, sscale, sshift)

    return {"seps": seps, "skip": skip}


# ---------------------------------------------------------------------------
# Pure-JAX reference (for verification)
# ---------------------------------------------------------------------------
def ref_block_forward(x, params, stride):
    def dwconv(z, w, dil, st):
        pad = dil
        zp = jnp.pad(z, ((0, 0), (0, 0), (pad, pad), (pad, pad)))
        return lax.conv_general_dilated(
            zp, w[:, None, :, :], (st, st), "VALID",
            rhs_dilation=(dil, dil),
            dimension_numbers=("NCHW", "OIHW", "NCHW"),
            feature_group_count=w.shape[0],
            precision=lax.Precision.HIGHEST)

    def pwconv(z, w):
        return lax.conv_general_dilated(
            z, w[:, :, None, None], (1, 1), "VALID",
            dimension_numbers=("NCHW", "OIHW", "NCHW"),
            precision=lax.Precision.HIGHEST)

    x1 = x
    for dw, pw, scale, shift, relu, dil, st in params["seps"]:
        x1 = pwconv(dwconv(x1, dw, dil, st), pw)
        x1 = x1 * scale.reshape(1, -1, 1, 1) + shift.reshape(1, -1, 1, 1)
        if relu:
            x1 = jnp.maximum(x1, 0.0)
    if params["skip"] is not None:
        sw, sscale, sshift = params["skip"]
        sk = pwconv(x[:, :, ::stride, ::stride], sw)
        sk = sk * sscale.reshape(1, -1, 1, 1) + sshift.reshape(1, -1, 1, 1)
    else:
        sk = x
    return jnp.maximum(sk + x1, 0.0)


# ---------------------------------------------------------------------------
if __name__ == "__main__":
    key = jax.random.PRNGKey(0)
    kx, kp = jax.random.split(key)

    # Block(in_channels=4, out_channels=8, reps=2, stride=1, dilation=2)
    N, CIN, H, W = 2, 4, 16, 16
    COUT, REPS, STRIDE, DILATION = 8, 2, 1, 2

    x = jax.random.normal(kx, (N, CIN, H, W), jnp.float32)
    params = init_block_params(kp, CIN, COUT, REPS, STRIDE, DILATION,
                               grow_first=True)

    out = jax.block_until_ready(block_forward(x, params, STRIDE))
    ref = jax.block_until_ready(ref_block_forward(x, params, STRIDE))

    assert out.shape == ref.shape, (out.shape, ref.shape)
    max_err = float(jnp.max(jnp.abs(out - ref)))
    if max_err > 1e-3:
        raise AssertionError(f"mismatch vs reference: max abs err {max_err}")

    print("KERNEL_OK")
</pallas_src>

<mosaic_0001>
module attributes {stable_mosaic.version = 11 : i64} {
  func.func @_block_kernel(%arg0: i32, %arg1: memref<1x4x256xf32, #tpu.memory_space<vmem>>, %arg2: memref<18x256xf32, #tpu.memory_space<vmem>>, %arg3: memref<4x9xf32, #tpu.memory_space<vmem>>, %arg4: memref<8x4xf32, #tpu.memory_space<vmem>>, %arg5: memref<8x1xf32, #tpu.memory_space<vmem>>, %arg6: memref<8x1xf32, #tpu.memory_space<vmem>>, %arg7: memref<8x9xf32, #tpu.memory_space<vmem>>, %arg8: memref<8x8xf32, #tpu.memory_space<vmem>>, %arg9: memref<8x1xf32, #tpu.memory_space<vmem>>, %arg10: memref<8x1xf32, #tpu.memory_space<vmem>>, %arg11: memref<8x9xf32, #tpu.memory_space<vmem>>, %arg12: memref<8x8xf32, #tpu.memory_space<vmem>>, %arg13: memref<8x1xf32, #tpu.memory_space<vmem>>, %arg14: memref<8x1xf32, #tpu.memory_space<vmem>>, %arg15: memref<8x4xf32, #tpu.memory_space<vmem>>, %arg16: memref<8x1xf32, #tpu.memory_space<vmem>>, %arg17: memref<8x1xf32, #tpu.memory_space<vmem>>, %arg18: memref<1x8x256xf32, #tpu.memory_space<vmem>>) attributes {dimension_semantics = [#tpu.dimension_semantics<parallel>], iteration_bounds = array<i64: 2>, scalar_prefetch = 0 : i64, scratch_operands = 0 : i64, tpu.core_type = #tpu.core_type<tc>, window_params = [{transform_indices = @transform_0, window_bounds = array<i64: 1, 4, 256>}, {pipeline_mode = #tpu.pipeline_mode<synchronous>, transform_indices = @transform_1, window_bounds = array<i64: 18, 256>}, {pipeline_mode = #tpu.pipeline_mode<synchronous>, transform_indices = @transform_2, window_bounds = array<i64: 4, 9>}, {pipeline_mode = #tpu.pipeline_mode<synchronous>, transform_indices = @transform_3, window_bounds = array<i64: 8, 4>}, {pipeline_mode = #tpu.pipeline_mode<synchronous>, transform_indices = @transform_4, window_bounds = array<i64: 8, 1>}, {pipeline_mode = #tpu.pipeline_mode<synchronous>, transform_indices = @transform_5, window_bounds = array<i64: 8, 1>}, {pipeline_mode = #tpu.pipeline_mode<synchronous>, transform_indices = @transform_6, window_bounds = array<i64: 8, 9>}, {pipeline_mode = #tpu.pipeline_mode<synchronous>, transform_indices = @transform_7, window_bounds = array<i64: 8, 8>}, {pipeline_mode = #tpu.pipeline_mode<synchronous>, transform_indices = @transform_8, window_bounds = array<i64: 8, 1>}, {pipeline_mode = #tpu.pipeline_mode<synchronous>, transform_indices = @transform_9, window_bounds = array<i64: 8, 1>}, {pipeline_mode = #tpu.pipeline_mode<synchronous>, transform_indices = @transform_10, window_bounds = array<i64: 8, 9>}, {pipeline_mode = #tpu.pipeline_mode<synchronous>, transform_indices = @transform_11, window_bounds = array<i64: 8, 8>}, {pipeline_mode = #tpu.pipeline_mode<synchronous>, transform_indices = @transform_12, window_bounds = array<i64: 8, 1>}, {pipeline_mode = #tpu.pipeline_mode<synchronous>, transform_indices = @transform_13, window_bounds = array<i64: 8, 1>}, {pipeline_mode = #tpu.pipeline_mode<synchronous>, transform_indices = @transform_14, window_bounds = array<i64: 8, 4>}, {pipeline_mode = #tpu.pipeline_mode<synchronous>, transform_indices = @transform_15, window_bounds = array<i64: 8, 1>}, {pipeline_mode = #tpu.pipeline_mode<synchronous>, transform_indices = @transform_16, window_bounds = array<i64: 8, 1>}, {transform_indices = @transform_17, window_bounds = array<i64: 1, 8, 256>}]} {
    %c0 = arith.constant 0 : index
    %c0_0 = arith.constant 0 : index
    %c0_1 = arith.constant 0 : index
    %0 = vector.load %arg1[%c0, %c0_0, %c0_1] : memref<1x4x256xf32, #tpu.memory_space<vmem>>, vector<1x4x256xf32>
    %1 = vector.shape_cast %0 : vector<1x4x256xf32> to vector<4x256xf32>
    %cst = arith.constant 0.000000e+00 : f32
    %2 = vector.broadcast %cst : f32 to vector<4x256xf32>
    %c34_i32 = arith.constant 34 : i32
    %3 = tpu.dynamic_rotate %1 by %c34_i32 dim 1 : vector<4x256xf32>, i32 -> vector<4x256xf32>
    %c9 = arith.constant 9 : index
    %c0_2 = arith.constant 0 : index
    %4 = vector.load %arg2[%c9, %c0_2] : memref<18x256xf32, #tpu.memory_space<vmem>>, vector<1x256xf32>
    %5 = vector.broadcast %4 : vector<1x256xf32> to vector<4x256xf32>
    %6 = arith.mulf %3, %5 : vector<4x256xf32>
    %c0_3 = arith.constant 0 : index
    %c0_4 = arith.constant 0 : index
    %7 = vector.load %arg3[%c0_3, %c0_4] : memref<4x9xf32, #tpu.memory_space<vmem>>, vector<4x1xf32>
    %8 = vector.broadcast %7 : vector<4x1xf32> to vector<4x256xf32>
    %9 = arith.mulf %8, %6 : vector<4x256xf32>
    %10 = arith.addf %2, %9 : vector<4x256xf32>
    %c32_i32 = arith.constant 32 : i32
    %11 = tpu.dynamic_rotate %1 by %c32_i32 dim 1 : vector<4x256xf32>, i32 -> vector<4x256xf32>
    %c10 = arith.constant 10 : index
    %c0_5 = arith.constant 0 : index
    %12 = vector.load %arg2[%c10, %c0_5] : memref<18x256xf32, #tpu.memory_space<vmem>>, vector<1x256xf32>
    %13 = vector.broadcast %12 : vector<1x256xf32> to vector<4x256xf32>
    %14 = arith.mulf %11, %13 : vector<4x256xf32>
    %c0_6 = arith.constant 0 : index
    %c1 = arith.constant 1 : index
    %15 = vector.load %arg3[%c0_6, %c1] : memref<4x9xf32, #tpu.memory_space<vmem>>, vector<4x1xf32>
    %16 = vector.broadcast %15 : vector<4x1xf32> to vector<4x256xf32>
    %17 = arith.mulf %16, %14 : vector<4x256xf32>
    %18 = arith.addf %10, %17 : vector<4x256xf32>
    %c30_i32 = arith.constant 30 : i32
    %19 = tpu.dynamic_rotate %1 by %c30_i32 dim 1 : vector<4x256xf32>, i32 -> vector<4x256xf32>
    %c11 = arith.constant 11 : index
    %c0_7 = arith.constant 0 : index
    %20 = vector.load %arg2[%c11, %c0_7] : memref<18x256xf32, #tpu.memory_space<vmem>>, vector<1x256xf32>
    %21 = vector.broadcast %20 : vector<1x256xf32> to vector<4x256xf32>
    %22 = arith.mulf %19, %21 : vector<4x256xf32>
    %c0_8 = arith.constant 0 : index
    %c2 = arith.constant 2 : index
    %23 = vector.load %arg3[%c0_8, %c2] : memref<4x9xf32, #tpu.memory_space<vmem>>, vector<4x1xf32>
    %24 = vector.broadcast %23 : vector<4x1xf32> to vector<4x256xf32>
    %25 = arith.mulf %24, %22 : vector<4x256xf32>
    %26 = arith.addf %18, %25 : vector<4x256xf32>
    %c2_i32 = arith.constant 2 : i32
    %27 = tpu.dynamic_rotate %1 by %c2_i32 dim 1 : vector<4x256xf32>, i32 -> vector<4x256xf32>
    %c12 = arith.constant 12 : index
    %c0_9 = arith.constant 0 : index
    %28 = vector.load %arg2[%c12, %c0_9] : memref<18x256xf32, #tpu.memory_space<vmem>>, vector<1x256xf32>
    %29 = vector.broadcast %28 : vector<1x256xf32> to vector<4x256xf32>
    %30 = arith.mulf %27, %29 : vector<4x256xf32>
    %c0_10 = arith.constant 0 : index
    %c3 = arith.constant 3 : index
    %31 = vector.load %arg3[%c0_10, %c3] : memref<4x9xf32, #tpu.memory_space<vmem>>, vector<4x1xf32>
    %32 = vector.broadcast %31 : vector<4x1xf32> to vector<4x256xf32>
    %33 = arith.mulf %32, %30 : vector<4x256xf32>
    %34 = arith.addf %26, %33 : vector<4x256xf32>
    %c0_11 = arith.constant 0 : index
    %c4 = arith.constant 4 : index
    %35 = vector.load %arg3[%c0_11, %c4] : memref<4x9xf32, #tpu.memory_space<vmem>>, vector<4x1xf32>
    %36 = vector.broadcast %35 : vector<4x1xf32> to vector<4x256xf32>
    %37 = arith.mulf %36, %1 : vector<4x256xf32>
    %38 = arith.addf %34, %37 : vector<4x256xf32>
    %c254_i32 = arith.constant 254 : i32
    %39 = tpu.dynamic_rotate %1 by %c254_i32 dim 1 : vector<4x256xf32>, i32 -> vector<4x256xf32>
    %c14 = arith.constant 14 : index
    %c0_12 = arith.constant 0 : index
    %40 = vector.load %arg2[%c14, %c0_12] : memref<18x256xf32, #tpu.memory_space<vmem>>, vector<1x256xf32>
    %41 = vector.broadcast %40 : vector<1x256xf32> to vector<4x256xf32>
    %42 = arith.mulf %39, %41 : vector<4x256xf32>
    %c0_13 = arith.constant 0 : index
    %c5 = arith.constant 5 : index
    %43 = vector.load %arg3[%c0_13, %c5] : memref<4x9xf32, #tpu.memory_space<vmem>>, vector<4x1xf32>
    %44 = vector.broadcast %43 : vector<4x1xf32> to vector<4x256xf32>
    %45 = arith.mulf %44, %42 : vector<4x256xf32>
    %46 = arith.addf %38, %45 : vector<4x256xf32>
    %c226_i32 = arith.constant 226 : i32
    %47 = tpu.dynamic_rotate %1 by %c226_i32 dim 1 : vector<4x256xf32>, i32 -> vector<4x256xf32>
    %c15 = arith.constant 15 : index
    %c0_14 = arith.constant 0 : index
    %48 = vector.load %arg2[%c15, %c0_14] : memref<18x256xf32, #tpu.memory_space<vmem>>, vector<1x256xf32>
    %49 = vector.broadcast %48 : vector<1x256xf32> to vector<4x256xf32>
    %50 = arith.mulf %47, %49 : vector<4x256xf32>
    %c0_15 = arith.constant 0 : index
    %c6 = arith.constant 6 : index
    %51 = vector.load %arg3[%c0_15, %c6] : memref<4x9xf32, #tpu.memory_space<vmem>>, vector<4x1xf32>
    %52 = vector.broadcast %51 : vector<4x1xf32> to vector<4x256xf32>
    %53 = arith.mulf %52, %50 : vector<4x256xf32>
    %54 = arith.addf %46, %53 : vector<4x256xf32>
    %c224_i32 = arith.constant 224 : i32
    %55 = tpu.dynamic_rotate %1 by %c224_i32 dim 1 : vector<4x256xf32>, i32 -> vector<4x256xf32>
    %c16 = arith.constant 16 : index
    %c0_16 = arith.constant 0 : index
    %56 = vector.load %arg2[%c16, %c0_16] : memref<18x256xf32, #tpu.memory_space<vmem>>, vector<1x256xf32>
    %57 = vector.broadcast %56 : vector<1x256xf32> to vector<4x256xf32>
    %58 = arith.mulf %55, %57 : vector<4x256xf32>
    %c0_17 = arith.constant 0 : index
    %c7 = arith.constant 7 : index
    %59 = vector.load %arg3[%c0_17, %c7] : memref<4x9xf32, #tpu.memory_space<vmem>>, vector<4x1xf32>
    %60 = vector.broadcast %59 : vector<4x1xf32> to vector<4x256xf32>
    %61 = arith.mulf %60, %58 : vector<4x256xf32>
    %62 = arith.addf %54, %61 : vector<4x256xf32>
    %c222_i32 = arith.constant 222 : i32
    %63 = tpu.dynamic_rotate %1 by %c222_i32 dim 1 : vector<4x256xf32>, i32 -> vector<4x256xf32>
    %c17 = arith.constant 17 : index
    %c0_18 = arith.constant 0 : index
    %64 = vector.load %arg2[%c17, %c0_18] : memref<18x256xf32, #tpu.memory_space<vmem>>, vector<1x256xf32>
    %65 = vector.broadcast %64 : vector<1x256xf32> to vector<4x256xf32>
    %66 = arith.mulf %63, %65 : vector<4x256xf32>
    %c0_19 = arith.constant 0 : index
    %c8 = arith.constant 8 : index
    %67 = vector.load %arg3[%c0_19, %c8] : memref<4x9xf32, #tpu.memory_space<vmem>>, vector<4x1xf32>
    %68 = vector.broadcast %67 : vector<4x1xf32> to vector<4x256xf32>
    %69 = arith.mulf %68, %66 : vector<4x256xf32>
    %70 = arith.addf %62, %69 : vector<4x256xf32>
    %cst_20 = arith.constant 0.000000e+00 : f32
    %71 = vector.broadcast %cst_20 : f32 to vector<8x256xf32>
    %c0_21 = arith.constant 0 : index
    %c0_22 = arith.constant 0 : index
    %72 = vector.load %arg4[%c0_21, %c0_22] : memref<8x4xf32, #tpu.memory_space<vmem>>, vector<8x1xf32>
    %73 = vector.extract_strided_slice %70 {offsets = [0, 0], sizes = [1, 256], strides = [1, 1]} : vector<4x256xf32> to vector<1x256xf32>
    %74 = vector.broadcast %72 : vector<8x1xf32> to vector<8x256xf32>
    %75 = vector.broadcast %73 : vector<1x256xf32> to vector<8x256xf32>
    %76 = arith.mulf %74, %75 : vector<8x256xf32>
    %77 = arith.addf %71, %76 : vector<8x256xf32>
    %c0_23 = arith.constant 0 : index
    %c1_24 = arith.constant 1 : index
    %78 = vector.load %arg4[%c0_23, %c1_24] : memref<8x4xf32, #tpu.memory_space<vmem>>, vector<8x1xf32>
    %79 = vector.extract_strided_slice %70 {offsets = [1, 0], sizes = [1, 256], strides = [1, 1]} : vector<4x256xf32> to vector<1x256xf32>
    %80 = vector.broadcast %78 : vector<8x1xf32> to vector<8x256xf32>
    %81 = vector.broadcast %79 : vector<1x256xf32> to vector<8x256xf32>
    %82 = arith.mulf %80, %81 : vector<8x256xf32>
    %83 = arith.addf %77, %82 : vector<8x256xf32>
    %c0_25 = arith.constant 0 : index
    %c2_26 = arith.constant 2 : index
    %84 = vector.load %arg4[%c0_25, %c2_26] : memref<8x4xf32, #tpu.memory_space<vmem>>, vector<8x1xf32>
    %85 = vector.extract_strided_slice %70 {offsets = [2, 0], sizes = [1, 256], strides = [1, 1]} : vector<4x256xf32> to vector<1x256xf32>
    %86 = vector.broadcast %84 : vector<8x1xf32> to vector<8x256xf32>
    %87 = vector.broadcast %85 : vector<1x256xf32> to vector<8x256xf32>
    %88 = arith.mulf %86, %87 : vector<8x256xf32>
    %89 = arith.addf %83, %88 : vector<8x256xf32>
    %c0_27 = arith.constant 0 : index
    %c3_28 = arith.constant 3 : index
    %90 = vector.load %arg4[%c0_27, %c3_28] : memref<8x4xf32, #tpu.memory_space<vmem>>, vector<8x1xf32>
    %91 = vector.extract_strided_slice %70 {offsets = [3, 0], sizes = [1, 256], strides = [1, 1]} : vector<4x256xf32> to vector<1x256xf32>
    %92 = vector.broadcast %90 : vector<8x1xf32> to vector<8x256xf32>
    %93 = vector.broadcast %91 : vector<1x256xf32> to vector<8x256xf32>
    %94 = arith.mulf %92, %93 : vector<8x256xf32>
    %95 = arith.addf %89, %94 : vector<8x256xf32>
    %c0_29 = arith.constant 0 : index
    %c0_30 = arith.constant 0 : index
    %96 = vector.load %arg5[%c0_29, %c0_30] : memref<8x1xf32, #tpu.memory_space<vmem>>, vector<8x1xf32>
    %97 = vector.broadcast %96 : vector<8x1xf32> to vector<8x256xf32>
    %98 = arith.mulf %95, %97 : vector<8x256xf32>
    %c0_31 = arith.constant 0 : index
    %c0_32 = arith.constant 0 : index
    %99 = vector.load %arg6[%c0_31, %c0_32] : memref<8x1xf32, #tpu.memory_space<vmem>>, vector<8x1xf32>
    %100 = vector.broadcast %99 : vector<8x1xf32> to vector<8x256xf32>
    %101 = arith.addf %98, %100 : vector<8x256xf32>
    %cst_33 = arith.constant 0.000000e+00 : f32
    %102 = vector.broadcast %cst_33 : f32 to vector<8x256xf32>
    %103 = arith.maximumf %101, %102 : vector<8x256xf32>
    %cst_34 = arith.constant 0.000000e+00 : f32
    %104 = vector.broadcast %cst_34 : f32 to vector<8x256xf32>
    %c34_i32_35 = arith.constant 34 : i32
    %105 = tpu.dynamic_rotate %103 by %c34_i32_35 dim 1 : vector<8x256xf32>, i32 -> vector<8x256xf32>
    %c9_36 = arith.constant 9 : index
    %c0_37 = arith.constant 0 : index
    %106 = vector.load %arg2[%c9_36, %c0_37] : memref<18x256xf32, #tpu.memory_space<vmem>>, vector<1x256xf32>
    %107 = vector.broadcast %106 : vector<1x256xf32> to vector<8x256xf32>
    %108 = arith.mulf %105, %107 : vector<8x256xf32>
    %c0_38 = arith.constant 0 : index
    %c0_39 = arith.constant 0 : index
    %109 = vector.load %arg7[%c0_38, %c0_39] : memref<8x9xf32, #tpu.memory_space<vmem>>, vector<8x1xf32>
    %110 = vector.broadcast %109 : vector<8x1xf32> to vector<8x256xf32>
    %111 = arith.mulf %110, %108 : vector<8x256xf32>
    %112 = arith.addf %104, %111 : vector<8x256xf32>
    %c32_i32_40 = arith.constant 32 : i32
    %113 = tpu.dynamic_rotate %103 by %c32_i32_40 dim 1 : vector<8x256xf32>, i32 -> vector<8x256xf32>
    %c10_41 = arith.constant 10 : index
    %c0_42 = arith.constant 0 : index
    %114 = vector.load %arg2[%c10_41, %c0_42] : memref<18x256xf32, #tpu.memory_space<vmem>>, vector<1x256xf32>
    %115 = vector.broadcast %114 : vector<1x256xf32> to vector<8x256xf32>
    %116 = arith.mulf %113, %115 : vector<8x256xf32>
    %c0_43 = arith.constant 0 : index
    %c1_44 = arith.constant 1 : index
    %117 = vector.load %arg7[%c0_43, %c1_44] : memref<8x9xf32, #tpu.memory_space<vmem>>, vector<8x1xf32>
    %118 = vector.broadcast %117 : vector<8x1xf32> to vector<8x256xf32>
    %119 = arith.mulf %118, %116 : vector<8x256xf32>
    %120 = arith.addf %112, %119 : vector<8x256xf32>
    %c30_i32_45 = arith.constant 30 : i32
    %121 = tpu.dynamic_rotate %103 by %c30_i32_45 dim 1 : vector<8x256xf32>, i32 -> vector<8x256xf32>
    %c11_46 = arith.constant 11 : index
    %c0_47 = arith.constant 0 : index
    %122 = vector.load %arg2[%c11_46, %c0_47] : memref<18x256xf32, #tpu.memory_space<vmem>>, vector<1x256xf32>
    %123 = vector.broadcast %122 : vector<1x256xf32> to vector<8x256xf32>
    %124 = arith.mulf %121, %123 : vector<8x256xf32>
    %c0_48 = arith.constant 0 : index
    %c2_49 = arith.constant 2 : index
    %125 = vector.load %arg7[%c0_48, %c2_49] : memref<8x9xf32, #tpu.memory_space<vmem>>, vector<8x1xf32>
    %126 = vector.broadcast %125 : vector<8x1xf32> to vector<8x256xf32>
    %127 = arith.mulf %126, %124 : vector<8x256xf32>
    %128 = arith.addf %120, %127 : vector<8x256xf32>
    %c2_i32_50 = arith.constant 2 : i32
    %129 = tpu.dynamic_rotate %103 by %c2_i32_50 dim 1 : vector<8x256xf32>, i32 -> vector<8x256xf32>
    %c12_51 = arith.constant 12 : index
    %c0_52 = arith.constant 0 : index
    %130 = vector.load %arg2[%c12_51, %c0_52] : memref<18x256xf32, #tpu.memory_space<vmem>>, vector<1x256xf32>
    %131 = vector.broadcast %130 : vector<1x256xf32> to vector<8x256xf32>
    %132 = arith.mulf %129, %131 : vector<8x256xf32>
    %c0_53 = arith.constant 0 : index
    %c3_54 = arith.constant 3 : index
    %133 = vector.load %arg7[%c0_53, %c3_54] : memref<8x9xf32, #tpu.memory_space<vmem>>, vector<8x1xf32>
    %134 = vector.broadcast %133 : vector<8x1xf32> to vector<8x256xf32>
    %135 = arith.mulf %134, %132 : vector<8x256xf32>
    %136 = arith.addf %128, %135 : vector<8x256xf32>
    %c0_55 = arith.constant 0 : index
    %c4_56 = arith.constant 4 : index
    %137 = vector.load %arg7[%c0_55, %c4_56] : memref<8x9xf32, #tpu.memory_space<vmem>>, vector<8x1xf32>
    %138 = vector.broadcast %137 : vector<8x1xf32> to vector<8x256xf32>
    %139 = arith.mulf %138, %103 : vector<8x256xf32>
    %140 = arith.addf %136, %139 : vector<8x256xf32>
    %c254_i32_57 = arith.constant 254 : i32
    %141 = tpu.dynamic_rotate %103 by %c254_i32_57 dim 1 : vector<8x256xf32>, i32 -> vector<8x256xf32>
    %c14_58 = arith.constant 14 : index
    %c0_59 = arith.constant 0 : index
    %142 = vector.load %arg2[%c14_58, %c0_59] : memref<18x256xf32, #tpu.memory_space<vmem>>, vector<1x256xf32>
    %143 = vector.broadcast %142 : vector<1x256xf32> to vector<8x256xf32>
    %144 = arith.mulf %141, %143 : vector<8x256xf32>
    %c0_60 = arith.constant 0 : index
    %c5_61 = arith.constant 5 : index
    %145 = vector.load %arg7[%c0_60, %c5_61] : memref<8x9xf32, #tpu.memory_space<vmem>>, vector<8x1xf32>
    %146 = vector.broadcast %145 : vector<8x1xf32> to vector<8x256xf32>
    %147 = arith.mulf %146, %144 : vector<8x256xf32>
    %148 = arith.addf %140, %147 : vector<8x256xf32>
    %c226_i32_62 = arith.constant 226 : i32
    %149 = tpu.dynamic_rotate %103 by %c226_i32_62 dim 1 : vector<8x256xf32>, i32 -> vector<8x256xf32>
    %c15_63 = arith.constant 15 : index
    %c0_64 = arith.constant 0 : index
    %150 = vector.load %arg2[%c15_63, %c0_64] : memref<18x256xf32, #tpu.memory_space<vmem>>, vector<1x256xf32>
    %151 = vector.broadcast %150 : vector<1x256xf32> to vector<8x256xf32>
    %152 = arith.mulf %149, %151 : vector<8x256xf32>
    %c0_65 = arith.constant 0 : index
    %c6_66 = arith.constant 6 : index
    %153 = vector.load %arg7[%c0_65, %c6_66] : memref<8x9xf32, #tpu.memory_space<vmem>>, vector<8x1xf32>
    %154 = vector.broadcast %153 : vector<8x1xf32> to vector<8x256xf32>
    %155 = arith.mulf %154, %152 : vector<8x256xf32>
    %156 = arith.addf %148, %155 : vector<8x256xf32>
    %c224_i32_67 = arith.constant 224 : i32
    %157 = tpu.dynamic_rotate %103 by %c224_i32_67 dim 1 : vector<8x256xf32>, i32 -> vector<8x256xf32>
    %c16_68 = arith.constant 16 : index
    %c0_69 = arith.constant 0 : index
    %158 = vector.load %arg2[%c16_68, %c0_69] : memref<18x256xf32, #tpu.memory_space<vmem>>, vector<1x256xf32>
    %159 = vector.broadcast %158 : vector<1x256xf32> to vector<8x256xf32>
    %160 = arith.mulf %157, %159 : vector<8x256xf32>
    %c0_70 = arith.constant 0 : index
    %c7_71 = arith.constant 7 : index
    %161 = vector.load %arg7[%c0_70, %c7_71] : memref<8x9xf32, #tpu.memory_space<vmem>>, vector<8x1xf32>
    %162 = vector.broadcast %161 : vector<8x1xf32> to vector<8x256xf32>
    %163 = arith.mulf %162, %160 : vector<8x256xf32>
    %164 = arith.addf %156, %163 : vector<8x256xf32>
    %c222_i32_72 = arith.constant 222 : i32
    %165 = tpu.dynamic_rotate %103 by %c222_i32_72 dim 1 : vector<8x256xf32>, i32 -> vector<8x256xf32>
    %c17_73 = arith.constant 17 : index
    %c0_74 = arith.constant 0 : index
    %166 = vector.load %arg2[%c17_73, %c0_74] : memref<18x256xf32, #tpu.memory_space<vmem>>, vector<1x256xf32>
    %167 = vector.broadcast %166 : vector<1x256xf32> to vector<8x256xf32>
    %168 = arith.mulf %165, %167 : vector<8x256xf32>
    %c0_75 = arith.constant 0 : index
    %c8_76 = arith.constant 8 : index
    %169 = vector.load %arg7[%c0_75, %c8_76] : memref<8x9xf32, #tpu.memory_space<vmem>>, vector<8x1xf32>
    %170 = vector.broadcast %169 : vector<8x1xf32> to vector<8x256xf32>
    %171 = arith.mulf %170, %168 : vector<8x256xf32>
    %172 = arith.addf %164, %171 : vector<8x256xf32>
    %cst_77 = arith.constant 0.000000e+00 : f32
    %173 = vector.broadcast %cst_77 : f32 to vector<8x256xf32>
    %c0_78 = arith.constant 0 : index
    %c0_79 = arith.constant 0 : index
    %174 = vector.load %arg8[%c0_78, %c0_79] : memref<8x8xf32, #tpu.memory_space<vmem>>, vector<8x1xf32>
    %175 = vector.extract_strided_slice %172 {offsets = [0, 0], sizes = [1, 256], strides = [1, 1]} : vector<8x256xf32> to vector<1x256xf32>
    %176 = vector.broadcast %174 : vector<8x1xf32> to vector<8x256xf32>
    %177 = vector.broadcast %175 : vector<1x256xf32> to vector<8x256xf32>
    %178 = arith.mulf %176, %177 : vector<8x256xf32>
    %179 = arith.addf %173, %178 : vector<8x256xf32>
    %c0_80 = arith.constant 0 : index
    %c1_81 = arith.constant 1 : index
    %180 = vector.load %arg8[%c0_80, %c1_81] : memref<8x8xf32, #tpu.memory_space<vmem>>, vector<8x1xf32>
    %181 = vector.extract_strided_slice %172 {offsets = [1, 0], sizes = [1, 256], strides = [1, 1]} : vector<8x256xf32> to vector<1x256xf32>
    %182 = vector.broadcast %180 : vector<8x1xf32> to vector<8x256xf32>
    %183 = vector.broadcast %181 : vector<1x256xf32> to vector<8x256xf32>
    %184 = arith.mulf %182, %183 : vector<8x256xf32>
    %185 = arith.addf %179, %184 : vector<8x256xf32>
    %c0_82 = arith.constant 0 : index
    %c2_83 = arith.constant 2 : index
    %186 = vector.load %arg8[%c0_82, %c2_83] : memref<8x8xf32, #tpu.memory_space<vmem>>, vector<8x1xf32>
    %187 = vector.extract_strided_slice %172 {offsets = [2, 0], sizes = [1, 256], strides = [1, 1]} : vector<8x256xf32> to vector<1x256xf32>
    %188 = vector.broadcast %186 : vector<8x1xf32> to vector<8x256xf32>
    %189 = vector.broadcast %187 : vector<1x256xf32> to vector<8x256xf32>
    %190 = arith.mulf %188, %189 : vector<8x256xf32>
    %191 = arith.addf %185, %190 : vector<8x256xf32>
    %c0_84 = arith.constant 0 : index
    %c3_85 = arith.constant 3 : index
    %192 = vector.load %arg8[%c0_84, %c3_85] : memref<8x8xf32, #tpu.memory_space<vmem>>, vector<8x1xf32>
    %193 = vector.extract_strided_slice %172 {offsets = [3, 0], sizes = [1, 256], strides = [1, 1]} : vector<8x256xf32> to vector<1x256xf32>
    %194 = vector.broadcast %192 : vector<8x1xf32> to vector<8x256xf32>
    %195 = vector.broadcast %193 : vector<1x256xf32> to vector<8x256xf32>
    %196 = arith.mulf %194, %195 : vector<8x256xf32>
    %197 = arith.addf %191, %196 : vector<8x256xf32>
    %c0_86 = arith.constant 0 : index
    %c4_87 = arith.constant 4 : index
    %198 = vector.load %arg8[%c0_86, %c4_87] : memref<8x8xf32, #tpu.memory_space<vmem>>, vector<8x1xf32>
    %199 = vector.extract_strided_slice %172 {offsets = [4, 0], sizes = [1, 256], strides = [1, 1]} : vector<8x256xf32> to vector<1x256xf32>
    %200 = vector.broadcast %198 : vector<8x1xf32> to vector<8x256xf32>
    %201 = vector.broadcast %199 : vector<1x256xf32> to vector<8x256xf32>
    %202 = arith.mulf %200, %201 : vector<8x256xf32>
    %203 = arith.addf %197, %202 : vector<8x256xf32>
    %c0_88 = arith.constant 0 : index
    %c5_89 = arith.constant 5 : index
    %204 = vector.load %arg8[%c0_88, %c5_89] : memref<8x8xf32, #tpu.memory_space<vmem>>, vector<8x1xf32>
    %205 = vector.extract_strided_slice %172 {offsets = [5, 0], sizes = [1, 256], strides = [1, 1]} : vector<8x256xf32> to vector<1x256xf32>
    %206 = vector.broadcast %204 : vector<8x1xf32> to vector<8x256xf32>
    %207 = vector.broadcast %205 : vector<1x256xf32> to vector<8x256xf32>
    %208 = arith.mulf %206, %207 : vector<8x256xf32>
    %209 = arith.addf %203, %208 : vector<8x256xf32>
    %c0_90 = arith.constant 0 : index
    %c6_91 = arith.constant 6 : index
    %210 = vector.load %arg8[%c0_90, %c6_91] : memref<8x8xf32, #tpu.memory_space<vmem>>, vector<8x1xf32>
    %211 = vector.extract_strided_slice %172 {offsets = [6, 0], sizes = [1, 256], strides = [1, 1]} : vector<8x256xf32> to vector<1x256xf32>
    %212 = vector.broadcast %210 : vector<8x1xf32> to vector<8x256xf32>
    %213 = vector.broadcast %211 : vector<1x256xf32> to vector<8x256xf32>
    %214 = arith.mulf %212, %213 : vector<8x256xf32>
    %215 = arith.addf %209, %214 : vector<8x256xf32>
    %c0_92 = arith.constant 0 : index
    %c7_93 = arith.constant 7 : index
    %216 = vector.load %arg8[%c0_92, %c7_93] : memref<8x8xf32, #tpu.memory_space<vmem>>, vector<8x1xf32>
    %217 = vector.extract_strided_slice %172 {offsets = [7, 0], sizes = [1, 256], strides = [1, 1]} : vector<8x256xf32> to vector<1x256xf32>
    %218 = vector.broadcast %216 : vector<8x1xf32> to vector<8x256xf32>
    %219 = vector.broadcast %217 : vector<1x256xf32> to vector<8x256xf32>
    %220 = arith.mulf %218, %219 : vector<8x256xf32>
    %221 = arith.addf %215, %220 : vector<8x256xf32>
    %c0_94 = arith.constant 0 : index
    %c0_95 = arith.constant 0 : index
    %222 = vector.load %arg9[%c0_94, %c0_95] : memref<8x1xf32, #tpu.memory_space<vmem>>, vector<8x1xf32>
    %223 = vector.broadcast %222 : vector<8x1xf32> to vector<8x256xf32>
    %224 = arith.mulf %221, %223 : vector<8x256xf32>
    %c0_96 = arith.constant 0 : index
    %c0_97 = arith.constant 0 : index
    %225 = vector.load %arg10[%c0_96, %c0_97] : memref<8x1xf32, #tpu.memory_space<vmem>>, vector<8x1xf32>
    %226 = vector.broadcast %225 : vector<8x1xf32> to vector<8x256xf32>
    %227 = arith.addf %224, %226 : vector<8x256xf32>
    %cst_98 = arith.constant 0.000000e+00 : f32
    %228 = vector.broadcast %cst_98 : f32 to vector<8x256xf32>
    %229 = arith.maximumf %227, %228 : vector<8x256xf32>
    %cst_99 = arith.constant 0.000000e+00 : f32
    %230 = vector.broadcast %cst_99 : f32 to vector<8x256xf32>
    %c17_i32 = arith.constant 17 : i32
    %231 = tpu.dynamic_rotate %229 by %c17_i32 dim 1 : vector<8x256xf32>, i32 -> vector<8x256xf32>
    %c0_100 = arith.constant 0 : index
    %c0_101 = arith.constant 0 : index
    %232 = vector.load %arg2[%c0_100, %c0_101] : memref<18x256xf32, #tpu.memory_space<vmem>>, vector<1x256xf32>
    %233 = vector.broadcast %232 : vector<1x256xf32> to vector<8x256xf32>
    %234 = arith.mulf %231, %233 : vector<8x256xf32>
    %c0_102 = arith.constant 0 : index
    %c0_103 = arith.constant 0 : index
    %235 = vector.load %arg11[%c0_102, %c0_103] : memref<8x9xf32, #tpu.memory_space<vmem>>, vector<8x1xf32>
    %236 = vector.broadcast %235 : vector<8x1xf32> to vector<8x256xf32>
    %237 = arith.mulf %236, %234 : vector<8x256xf32>
    %238 = arith.addf %230, %237 : vector<8x256xf32>
    %c16_i32 = arith.constant 16 : i32
    %239 = tpu.dynamic_rotate %229 by %c16_i32 dim 1 : vector<8x256xf32>, i32 -> vector<8x256xf32>
    %c1_104 = arith.constant 1 : index
    %c0_105 = arith.constant 0 : index
    %240 = vector.load %arg2[%c1_104, %c0_105] : memref<18x256xf32, #tpu.memory_space<vmem>>, vector<1x256xf32>
    %241 = vector.broadcast %240 : vector<1x256xf32> to vector<8x256xf32>
    %242 = arith.mulf %239, %241 : vector<8x256xf32>
    %c0_106 = arith.constant 0 : index
    %c1_107 = arith.constant 1 : index
    %243 = vector.load %arg11[%c0_106, %c1_107] : memref<8x9xf32, #tpu.memory_space<vmem>>, vector<8x1xf32>
    %244 = vector.broadcast %243 : vector<8x1xf32> to vector<8x256xf32>
    %245 = arith.mulf %244, %242 : vector<8x256xf32>
    %246 = arith.addf %238, %245 : vector<8x256xf32>
    %c15_i32 = arith.constant 15 : i32
    %247 = tpu.dynamic_rotate %229 by %c15_i32 dim 1 : vector<8x256xf32>, i32 -> vector<8x256xf32>
    %c2_108 = arith.constant 2 : index
    %c0_109 = arith.constant 0 : index
    %248 = vector.load %arg2[%c2_108, %c0_109] : memref<18x256xf32, #tpu.memory_space<vmem>>, vector<1x256xf32>
    %249 = vector.broadcast %248 : vector<1x256xf32> to vector<8x256xf32>
    %250 = arith.mulf %247, %249 : vector<8x256xf32>
    %c0_110 = arith.constant 0 : index
    %c2_111 = arith.constant 2 : index
    %251 = vector.load %arg11[%c0_110, %c2_111] : memref<8x9xf32, #tpu.memory_space<vmem>>, vector<8x1xf32>
    %252 = vector.broadcast %251 : vector<8x1xf32> to vector<8x256xf32>
    %253 = arith.mulf %252, %250 : vector<8x256xf32>
    %254 = arith.addf %246, %253 : vector<8x256xf32>
    %c1_i32 = arith.constant 1 : i32
    %255 = tpu.dynamic_rotate %229 by %c1_i32 dim 1 : vector<8x256xf32>, i32 -> vector<8x256xf32>
    %c3_112 = arith.constant 3 : index
    %c0_113 = arith.constant 0 : index
    %256 = vector.load %arg2[%c3_112, %c0_113] : memref<18x256xf32, #tpu.memory_space<vmem>>, vector<1x256xf32>
    %257 = vector.broadcast %256 : vector<1x256xf32> to vector<8x256xf32>
    %258 = arith.mulf %255, %257 : vector<8x256xf32>
    %c0_114 = arith.constant 0 : index
    %c3_115 = arith.constant 3 : index
    %259 = vector.load %arg11[%c0_114, %c3_115] : memref<8x9xf32, #tpu.memory_space<vmem>>, vector<8x1xf32>
    %260 = vector.broadcast %259 : vector<8x1xf32> to vector<8x256xf32>
    %261 = arith.mulf %260, %258 : vector<8x256xf32>
    %262 = arith.addf %254, %261 : vector<8x256xf32>
    %c0_116 = arith.constant 0 : index
    %c4_117 = arith.constant 4 : index
    %263 = vector.load %arg11[%c0_116, %c4_117] : memref<8x9xf32, #tpu.memory_space<vmem>>, vector<8x1xf32>
    %264 = vector.broadcast %263 : vector<8x1xf32> to vector<8x256xf32>
    %265 = arith.mulf %264, %229 : vector<8x256xf32>
    %266 = arith.addf %262, %265 : vector<8x256xf32>
    %c255_i32 = arith.constant 255 : i32
    %267 = tpu.dynamic_rotate %229 by %c255_i32 dim 1 : vector<8x256xf32>, i32 -> vector<8x256xf32>
    %c5_118 = arith.constant 5 : index
    %c0_119 = arith.constant 0 : index
    %268 = vector.load %arg2[%c5_118, %c0_119] : memref<18x256xf32, #tpu.memory_space<vmem>>, vector<1x256xf32>
    %269 = vector.broadcast %268 : vector<1x256xf32> to vector<8x256xf32>
    %270 = arith.mulf %267, %269 : vector<8x256xf32>
    %c0_120 = arith.constant 0 : index
    %c5_121 = arith.constant 5 : index
    %271 = vector.load %arg11[%c0_120, %c5_121] : memref<8x9xf32, #tpu.memory_space<vmem>>, vector<8x1xf32>
    %272 = vector.broadcast %271 : vector<8x1xf32> to vector<8x256xf32>
    %273 = arith.mulf %272, %270 : vector<8x256xf32>
    %274 = arith.addf %266, %273 : vector<8x256xf32>
    %c241_i32 = arith.constant 241 : i32
    %275 = tpu.dynamic_rotate %229 by %c241_i32 dim 1 : vector<8x256xf32>, i32 -> vector<8x256xf32>
    %c6_122 = arith.constant 6 : index
    %c0_123 = arith.constant 0 : index
    %276 = vector.load %arg2[%c6_122, %c0_123] : memref<18x256xf32, #tpu.memory_space<vmem>>, vector<1x256xf32>
    %277 = vector.broadcast %276 : vector<1x256xf32> to vector<8x256xf32>
    %278 = arith.mulf %275, %277 : vector<8x256xf32>
    %c0_124 = arith.constant 0 : index
    %c6_125 = arith.constant 6 : index
    %279 = vector.load %arg11[%c0_124, %c6_125] : memref<8x9xf32, #tpu.memory_space<vmem>>, vector<8x1xf32>
    %280 = vector.broadcast %279 : vector<8x1xf32> to vector<8x256xf32>
    %281 = arith.mulf %280, %278 : vector<8x256xf32>
    %282 = arith.addf %274, %281 : vector<8x256xf32>
    %c240_i32 = arith.constant 240 : i32
    %283 = tpu.dynamic_rotate %229 by %c240_i32 dim 1 : vector<8x256xf32>, i32 -> vector<8x256xf32>
    %c7_126 = arith.constant 7 : index
    %c0_127 = arith.constant 0 : index
    %284 = vector.load %arg2[%c7_126, %c0_127] : memref<18x256xf32, #tpu.memory_space<vmem>>, vector<1x256xf32>
    %285 = vector.broadcast %284 : vector<1x256xf32> to vector<8x256xf32>
    %286 = arith.mulf %283, %285 : vector<8x256xf32>
    %c0_128 = arith.constant 0 : index
    %c7_129 = arith.constant 7 : index
    %287 = vector.load %arg11[%c0_128, %c7_129] : memref<8x9xf32, #tpu.memory_space<vmem>>, vector<8x1xf32>
    %288 = vector.broadcast %287 : vector<8x1xf32> to vector<8x256xf32>
    %289 = arith.mulf %288, %286 : vector<8x256xf32>
    %290 = arith.addf %282, %289 : vector<8x256xf32>
    %c239_i32 = arith.constant 239 : i32
    %291 = tpu.dynamic_rotate %229 by %c239_i32 dim 1 : vector<8x256xf32>, i32 -> vector<8x256xf32>
    %c8_130 = arith.constant 8 : index
    %c0_131 = arith.constant 0 : index
    %292 = vector.load %arg2[%c8_130, %c0_131] : memref<18x256xf32, #tpu.memory_space<vmem>>, vector<1x256xf32>
    %293 = vector.broadcast %292 : vector<1x256xf32> to vector<8x256xf32>
    %294 = arith.mulf %291, %293 : vector<8x256xf32>
    %c0_132 = arith.constant 0 : index
    %c8_133 = arith.constant 8 : index
    %295 = vector.load %arg11[%c0_132, %c8_133] : memref<8x9xf32, #tpu.memory_space<vmem>>, vector<8x1xf32>
    %296 = vector.broadcast %295 : vector<8x1xf32> to vector<8x256xf32>
    %297 = arith.mulf %296, %294 : vector<8x256xf32>
    %298 = arith.addf %290, %297 : vector<8x256xf32>
    %cst_134 = arith.constant 0.000000e+00 : f32
    %299 = vector.broadcast %cst_134 : f32 to vector<8x256xf32>
    %c0_135 = arith.constant 0 : index
    %c0_136 = arith.constant 0 : index
    %300 = vector.load %arg12[%c0_135, %c0_136] : memref<8x8xf32, #tpu.memory_space<vmem>>, vector<8x1xf32>
    %301 = vector.extract_strided_slice %298 {offsets = [0, 0], sizes = [1, 256], strides = [1, 1]} : vector<8x256xf32> to vector<1x256xf32>
    %302 = vector.broadcast %300 : vector<8x1xf32> to vector<8x256xf32>
    %303 = vector.broadcast %301 : vector<1x256xf32> to vector<8x256xf32>
    %304 = arith.mulf %302, %303 : vector<8x256xf32>
    %305 = arith.addf %299, %304 : vector<8x256xf32>
    %c0_137 = arith.constant 0 : index
    %c1_138 = arith.constant 1 : index
    %306 = vector.load %arg12[%c0_137, %c1_138] : memref<8x8xf32, #tpu.memory_space<vmem>>, vector<8x1xf32>
    %307 = vector.extract_strided_slice %298 {offsets = [1, 0], sizes = [1, 256], strides = [1, 1]} : vector<8x256xf32> to vector<1x256xf32>
    %308 = vector.broadcast %306 : vector<8x1xf32> to vector<8x256xf32>
    %309 = vector.broadcast %307 : vector<1x256xf32> to vector<8x256xf32>
    %310 = arith.mulf %308, %309 : vector<8x256xf32>
    %311 = arith.addf %305, %310 : vector<8x256xf32>
    %c0_139 = arith.constant 0 : index
    %c2_140 = arith.constant 2 : index
    %312 = vector.load %arg12[%c0_139, %c2_140] : memref<8x8xf32, #tpu.memory_space<vmem>>, vector<8x1xf32>
    %313 = vector.extract_strided_slice %298 {offsets = [2, 0], sizes = [1, 256], strides = [1, 1]} : vector<8x256xf32> to vector<1x256xf32>
    %314 = vector.broadcast %312 : vector<8x1xf32> to vector<8x256xf32>
    %315 = vector.broadcast %313 : vector<1x256xf32> to vector<8x256xf32>
    %316 = arith.mulf %314, %315 : vector<8x256xf32>
    %317 = arith.addf %311, %316 : vector<8x256xf32>
    %c0_141 = arith.constant 0 : index
    %c3_142 = arith.constant 3 : index
    %318 = vector.load %arg12[%c0_141, %c3_142] : memref<8x8xf32, #tpu.memory_space<vmem>>, vector<8x1xf32>
    %319 = vector.extract_strided_slice %298 {offsets = [3, 0], sizes = [1, 256], strides = [1, 1]} : vector<8x256xf32> to vector<1x256xf32>
    %320 = vector.broadcast %318 : vector<8x1xf32> to vector<8x256xf32>
    %321 = vector.broadcast %319 : vector<1x256xf32> to vector<8x256xf32>
    %322 = arith.mulf %320, %321 : vector<8x256xf32>
    %323 = arith.addf %317, %322 : vector<8x256xf32>
    %c0_143 = arith.constant 0 : index
    %c4_144 = arith.constant 4 : index
    %324 = vector.load %arg12[%c0_143, %c4_144] : memref<8x8xf32, #tpu.memory_space<vmem>>, vector<8x1xf32>
    %325 = vector.extract_strided_slice %298 {offsets = [4, 0], sizes = [1, 256], strides = [1, 1]} : vector<8x256xf32> to vector<1x256xf32>
    %326 = vector.broadcast %324 : vector<8x1xf32> to vector<8x256xf32>
    %327 = vector.broadcast %325 : vector<1x256xf32> to vector<8x256xf32>
    %328 = arith.mulf %326, %327 : vector<8x256xf32>
    %329 = arith.addf %323, %328 : vector<8x256xf32>
    %c0_145 = arith.constant 0 : index
    %c5_146 = arith.constant 5 : index
    %330 = vector.load %arg12[%c0_145, %c5_146] : memref<8x8xf32, #tpu.memory_space<vmem>>, vector<8x1xf32>
    %331 = vector.extract_strided_slice %298 {offsets = [5, 0], sizes = [1, 256], strides = [1, 1]} : vector<8x256xf32> to vector<1x256xf32>
    %332 = vector.broadcast %330 : vector<8x1xf32> to vector<8x256xf32>
    %333 = vector.broadcast %331 : vector<1x256xf32> to vector<8x256xf32>
    %334 = arith.mulf %332, %333 : vector<8x256xf32>
    %335 = arith.addf %329, %334 : vector<8x256xf32>
    %c0_147 = arith.constant 0 : index
    %c6_148 = arith.constant 6 : index
    %336 = vector.load %arg12[%c0_147, %c6_148] : memref<8x8xf32, #tpu.memory_space<vmem>>, vector<8x1xf32>
    %337 = vector.extract_strided_slice %298 {offsets = [6, 0], sizes = [1, 256], strides = [1, 1]} : vector<8x256xf32> to vector<1x256xf32>
    %338 = vector.broadcast %336 : vector<8x1xf32> to vector<8x256xf32>
    %339 = vector.broadcast %337 : vector<1x256xf32> to vector<8x256xf32>
    %340 = arith.mulf %338, %339 : vector<8x256xf32>
    %341 = arith.addf %335, %340 : vector<8x256xf32>
    %c0_149 = arith.constant 0 : index
    %c7_150 = arith.constant 7 : index
    %342 = vector.load %arg12[%c0_149, %c7_150] : memref<8x8xf32, #tpu.memory_space<vmem>>, vector<8x1xf32>
    %343 = vector.extract_strided_slice %298 {offsets = [7, 0], sizes = [1, 256], strides = [1, 1]} : vector<8x256xf32> to vector<1x256xf32>
    %344 = vector.broadcast %342 : vector<8x1xf32> to vector<8x256xf32>
    %345 = vector.broadcast %343 : vector<1x256xf32> to vector<8x256xf32>
    %346 = arith.mulf %344, %345 : vector<8x256xf32>
    %347 = arith.addf %341, %346 : vector<8x256xf32>
    %c0_151 = arith.constant 0 : index
    %c0_152 = arith.constant 0 : index
    %348 = vector.load %arg13[%c0_151, %c0_152] : memref<8x1xf32, #tpu.memory_space<vmem>>, vector<8x1xf32>
    %349 = vector.broadcast %348 : vector<8x1xf32> to vector<8x256xf32>
    %350 = arith.mulf %347, %349 : vector<8x256xf32>
    %c0_153 = arith.constant 0 : index
    %c0_154 = arith.constant 0 : index
    %351 = vector.load %arg14[%c0_153, %c0_154] : memref<8x1xf32, #tpu.memory_space<vmem>>, vector<8x1xf32>
    %352 = vector.broadcast %351 : vector<8x1xf32> to vector<8x256xf32>
    %353 = arith.addf %350, %352 : vector<8x256xf32>
    %cst_155 = arith.constant 0.000000e+00 : f32
    %354 = vector.broadcast %cst_155 : f32 to vector<8x256xf32>
    %c0_156 = arith.constant 0 : index
    %c0_157 = arith.constant 0 : index
    %355 = vector.load %arg15[%c0_156, %c0_157] : memref<8x4xf32, #tpu.memory_space<vmem>>, vector<8x1xf32>
    %356 = vector.extract_strided_slice %1 {offsets = [0, 0], sizes = [1, 256], strides = [1, 1]} : vector<4x256xf32> to vector<1x256xf32>
    %357 = vector.broadcast %355 : vector<8x1xf32> to vector<8x256xf32>
    %358 = vector.broadcast %356 : vector<1x256xf32> to vector<8x256xf32>
    %359 = arith.mulf %357, %358 : vector<8x256xf32>
    %360 = arith.addf %354, %359 : vector<8x256xf32>
    %c0_158 = arith.constant 0 : index
    %c1_159 = arith.constant 1 : index
    %361 = vector.load %arg15[%c0_158, %c1_159] : memref<8x4xf32, #tpu.memory_space<vmem>>, vector<8x1xf32>
    %362 = vector.extract_strided_slice %1 {offsets = [1, 0], sizes = [1, 256], strides = [1, 1]} : vector<4x256xf32> to vector<1x256xf32>
    %363 = vector.broadcast %361 : vector<8x1xf32> to vector<8x256xf32>
    %364 = vector.broadcast %362 : vector<1x256xf32> to vector<8x256xf32>
    %365 = arith.mulf %363, %364 : vector<8x256xf32>
    %366 = arith.addf %360, %365 : vector<8x256xf32>
    %c0_160 = arith.constant 0 : index
    %c2_161 = arith.constant 2 : index
    %367 = vector.load %arg15[%c0_160, %c2_161] : memref<8x4xf32, #tpu.memory_space<vmem>>, vector<8x1xf32>
    %368 = vector.extract_strided_slice %1 {offsets = [2, 0], sizes = [1, 256], strides = [1, 1]} : vector<4x256xf32> to vector<1x256xf32>
    %369 = vector.broadcast %367 : vector<8x1xf32> to vector<8x256xf32>
    %370 = vector.broadcast %368 : vector<1x256xf32> to vector<8x256xf32>
    %371 = arith.mulf %369, %370 : vector<8x256xf32>
    %372 = arith.addf %366, %371 : vector<8x256xf32>
    %c0_162 = arith.constant 0 : index
    %c3_163 = arith.constant 3 : index
    %373 = vector.load %arg15[%c0_162, %c3_163] : memref<8x4xf32, #tpu.memory_space<vmem>>, vector<8x1xf32>
    %374 = vector.extract_strided_slice %1 {offsets = [3, 0], sizes = [1, 256], strides = [1, 1]} : vector<4x256xf32> to vector<1x256xf32>
    %375 = vector.broadcast %373 : vector<8x1xf32> to vector<8x256xf32>
    %376 = vector.broadcast %374 : vector<1x256xf32> to vector<8x256xf32>
    %377 = arith.mulf %375, %376 : vector<8x256xf32>
    %378 = arith.addf %372, %377 : vector<8x256xf32>
    %c0_164 = arith.constant 0 : index
    %c0_165 = arith.constant 0 : index
    %379 = vector.load %arg16[%c0_164, %c0_165] : memref<8x1xf32, #tpu.memory_space<vmem>>, vector<8x1xf32>
    %380 = vector.broadcast %379 : vector<8x1xf32> to vector<8x256xf32>
    %381 = arith.mulf %378, %380 : vector<8x256xf32>
    %c0_166 = arith.constant 0 : index
    %c0_167 = arith.constant 0 : index
    %382 = vector.load %arg17[%c0_166, %c0_167] : memref<8x1xf32, #tpu.memory_space<vmem>>, vector<8x1xf32>
    %383 = vector.broadcast %382 : vector<8x1xf32> to vector<8x256xf32>
    %384 = arith.addf %381, %383 : vector<8x256xf32>
    %385 = arith.addf %384, %353 : vector<8x256xf32>
    %cst_168 = arith.constant 0.000000e+00 : f32
    %386 = vector.broadcast %cst_168 : f32 to vector<8x256xf32>
    %387 = arith.maximumf %385, %386 : vector<8x256xf32>
    %c0_169 = arith.constant 0 : index
    %c0_170 = arith.constant 0 : index
    %c0_171 = arith.constant 0 : index
    %388 = vector.load %arg18[%c0_169, %c0_170, %c0_171] : memref<1x8x256xf32, #tpu.memory_space<vmem>>, vector<1x8x256xf32>
    %389 = vector.shape_cast %388 : vector<1x8x256xf32> to vector<8x256xf32>
    %390 = vector.shape_cast %387 : vector<8x256xf32> to vector<1x8x256xf32>
    tpu.vector_store %arg18[%c0_169, %c0_170, %c0_171], %390 {strides = array<i32>} : memref<1x8x256xf32, #tpu.memory_space<vmem>>, vector<1x8x256xf32>,
    return
  }
  func.func @transform_0(%arg0: i32) -> (i32, i32, i32) {
    %c0_i32 = arith.constant 0 : i32
    %c0_i32_0 = arith.constant 0 : i32
    %c0_i32_1 = arith.constant 0 : i32
    return %arg0, %c0_i32, %c0_i32_0 : i32, i32, i32
  }
  func.func @transform_1(%arg0: i32) -> (i32, i32) {
    %c0_i32 = arith.constant 0 : i32
    %c0_i32_0 = arith.constant 0 : i32
    %c0_i32_1 = arith.constant 0 : i32
    return %c0_i32, %c0_i32_0 : i32, i32
  }
  func.func @transform_2(%arg0: i32) -> (i32, i32) {
    %c0_i32 = arith.constant 0 : i32
    %c0_i32_0 = arith.constant 0 : i32
    %c0_i32_1 = arith.constant 0 : i32
    return %c0_i32, %c0_i32_0 : i32, i32
  }
  func.func @transform_3(%arg0: i32) -> (i32, i32) {
    %c0_i32 = arith.constant 0 : i32
    %c0_i32_0 = arith.constant 0 : i32
    %c0_i32_1 = arith.constant 0 : i32
    return %c0_i32, %c0_i32_0 : i32, i32
  }
  func.func @transform_4(%arg0: i32) -> (i32, i32) {
    %c0_i32 = arith.constant 0 : i32
    %c0_i32_0 = arith.constant 0 : i32
    %c0_i32_1 = arith.constant 0 : i32
    return %c0_i32, %c0_i32_0 : i32, i32
  }
  func.func @transform_5(%arg0: i32) -> (i32, i32) {
    %c0_i32 = arith.constant 0 : i32
    %c0_i32_0 = arith.constant 0 : i32
    %c0_i32_1 = arith.constant 0 : i32
    return %c0_i32, %c0_i32_0 : i32, i32
  }
  func.func @transform_6(%arg0: i32) -> (i32, i32) {
    %c0_i32 = arith.constant 0 : i32
    %c0_i32_0 = arith.constant 0 : i32
    %c0_i32_1 = arith.constant 0 : i32
    return %c0_i32, %c0_i32_0 : i32, i32
  }
  func.func @transform_7(%arg0: i32) -> (i32, i32) {
    %c0_i32 = arith.constant 0 : i32
    %c0_i32_0 = arith.constant 0 : i32
    %c0_i32_1 = arith.constant 0 : i32
    return %c0_i32, %c0_i32_0 : i32, i32
  }
  func.func @transform_8(%arg0: i32) -> (i32, i32) {
    %c0_i32 = arith.constant 0 : i32
    %c0_i32_0 = arith.constant 0 : i32
    %c0_i32_1 = arith.constant 0 : i32
    return %c0_i32, %c0_i32_0 : i32, i32
  }
  func.func @transform_9(%arg0: i32) -> (i32, i32) {
    %c0_i32 = arith.constant 0 : i32
    %c0_i32_0 = arith.constant 0 : i32
    %c0_i32_1 = arith.constant 0 : i32
    return %c0_i32, %c0_i32_0 : i32, i32
  }
  func.func @transform_10(%arg0: i32) -> (i32, i32) {
    %c0_i32 = arith.constant 0 : i32
    %c0_i32_0 = arith.constant 0 : i32
    %c0_i32_1 = arith.constant 0 : i32
    return %c0_i32, %c0_i32_0 : i32, i32
  }
  func.func @transform_11(%arg0: i32) -> (i32, i32) {
    %c0_i32 = arith.constant 0 : i32
    %c0_i32_0 = arith.constant 0 : i32
    %c0_i32_1 = arith.constant 0 : i32
    return %c0_i32, %c0_i32_0 : i32, i32
  }
  func.func @transform_12(%arg0: i32) -> (i32, i32) {
    %c0_i32 = arith.constant 0 : i32
    %c0_i32_0 = arith.constant 0 : i32
    %c0_i32_1 = arith.constant 0 : i32
    return %c0_i32, %c0_i32_0 : i32, i32
  }
  func.func @transform_13(%arg0: i32) -> (i32, i32) {
    %c0_i32 = arith.constant 0 : i32
    %c0_i32_0 = arith.constant 0 : i32
    %c0_i32_1 = arith.constant 0 : i32
    return %c0_i32, %c0_i32_0 : i32, i32
  }
  func.func @transform_14(%arg0: i32) -> (i32, i32) {
    %c0_i32 = arith.constant 0 : i32
    %c0_i32_0 = arith.constant 0 : i32
    %c0_i32_1 = arith.constant 0 : i32
    return %c0_i32, %c0_i32_0 : i32, i32
  }
  func.func @transform_15(%arg0: i32) -> (i32, i32) {
    %c0_i32 = arith.constant 0 : i32
    %c0_i32_0 = arith.constant 0 : i32
    %c0_i32_1 = arith.constant 0 : i32
    return %c0_i32, %c0_i32_0 : i32, i32
  }
  func.func @transform_16(%arg0: i32) -> (i32, i32) {
    %c0_i32 = arith.constant 0 : i32
    %c0_i32_0 = arith.constant 0 : i32
    %c0_i32_1 = arith.constant 0 : i32
    return %c0_i32, %c0_i32_0 : i32, i32
  }
  func.func @transform_17(%arg0: i32) -> (i32, i32, i32) {
    %c0_i32 = arith.constant 0 : i32
    %c0_i32_0 = arith.constant 0 : i32
    %c0_i32_1 = arith.constant 0 : i32
    return %arg0, %c0_i32, %c0_i32_0 : i32, i32, i32
  }
}

</mosaic_0001>

<bundles_post_ra>
// kernel: tpu_custom_call.1
= control target key start
LH: loop header
LB: loop body
LE: loop exit
PB: predicated region body
PF: predicated region fallthrough
CT: control target
= control target key end

     0   :  { %s2984_s0 = inlined_call_operand.vmem [shape: f32[2,4,256], index: 0, kind: input, shape index: {}]   ;;  %s2985_s1 = inlined_call_operand.vmem [shape: f32[18,256], index: 1, kind: input, shape index: {}]   ;;  %s2986_s2 = inlined_call_operand.hbm [shape: f32[4,9], index: 2, kind: input, shape index: {}]   ;;  %s2987_s3 = inlined_call_operand.vmem [shape: f32[8,4], index: 3, kind: input, shape index: {}]   ;;  %s2988_s4 = inlined_call_operand.vmem [shape: f32[8,1], index: 4, kind: input, shape index: {}]   ;;  %s2989_s5 = inlined_call_operand.vmem [shape: f32[8,1], index: 5, kind: input, shape index: {}]   ;;  %s2990_s6 = inlined_call_operand.vmem [shape: f32[8,9], index: 6, kind: input, shape index: {}]   ;;  %s2991_s7 = inlined_call_operand.vmem [shape: f32[8,8], index: 7, kind: input, shape index: {}]   ;;  %s2992_s8 = inlined_call_operand.vmem [shape: f32[8,1], index: 8, kind: input, shape index: {}]   ;;  %s2993_s9 = inlined_call_operand.vmem [shape: f32[8,1], index: 9, kind: input, shape index: {}]   ;;  %s2994_s10 = inlined_call_operand.vmem [shape: f32[8,9], index: 10, kind: input, shape index: {}]   ;;  %s2995_s11 = inlined_call_operand.vmem [shape: f32[8,8], index: 11, kind: input, shape index: {}]   ;;  %s2996_s12 = inlined_call_operand.vmem [shape: f32[8,1], index: 12, kind: input, shape index: {}]   ;;  %s2997_s13 = inlined_call_operand.vmem [shape: f32[8,1], index: 13, kind: input, shape index: {}]   ;;  %s2998_s14 = inlined_call_operand.vmem [shape: f32[8,4], index: 14, kind: input, shape index: {}]   ;;  %s2999_s15 = inlined_call_operand.vmem [shape: f32[8,1], index: 15, kind: input, shape index: {}]   ;;  %s3000_s16 = inlined_call_operand.vmem [shape: f32[8,1], index: 16, kind: input, shape index: {}]   ;;  %s3001_s17 = inlined_call_operand.hbm [shape: f32[2,8,256], index: 17, kind: output, shape index: {}]  }
   0x1   :  { %3023 = sst [smem:[#allocation13_spill]] %s2984_s0 }
   0x2   :  { %3024 = sst [smem:[#allocation14_spill]] %s2985_s1 }
   0x3   :  { %22 = vsyncpa [#allocation3], 0 }
   0x4   :  { %23 = vsyncpa [#allocation4], 0 }
   0x5   :  { %25 = vsyncpa [#allocation4 + $0x1], 0  ;;  %s2184_s24 = smov 0   ;;  %s2186_s25 = smov 0  }
   0x6   :  { %s2188_s26 = smov 0   ;;  %s2190_s27 = smov 0  }
   0x7 LB: > { %3025 = sst [smem:[#allocation8_spill]] %s2053_s24  ;;  %s2205_s28 = sadd.s32 4294967295, %s2065_s27   ;;  %s2065_s27 = sphi %s2190_s27, %s3050_s27   ;;  %s2061_s26 = sphi %s2188_s26, %s3052_s26   ;;  %s2057_s25 = sphi %s2186_s25, %s3054_s25   ;;  %s2053_s24 = sphi %s2184_s24, %s3053_s24  }
   0x8   : > { %3026 = sst [smem:[#allocation9_spill]] %s2061_s26  ;;  %s1809_s29 = sadd.s32 4294967294, %s2065_s27  }
   0x9   : > { %s2209_s0 = sadd.s32 1, %s2065_s27   ;;  %s400_s30 = sadd.s32 1, %s2061_s26 }
   0xa   : > { %3027 = sst [smem:[#allocation10_spill]] %s2209_s0  ;;  %s397_s18 = ssub.s32 %s2065_s27, %s2209_s0 }
   0xb   : > { %p410_p0 = scmp.ne.s32.totalorder %s2061_s26, %s2057_s25  ;;  %p398_p1 = scmp.eq.s32.totalorder %s397_s18, 0 }
   0xc   : > { %p411_p2 = scmp.eq.s32.totalorder %s2205_s28, 1  ;;  %p416_p3 = scmp.ne.s32.totalorder %s2057_s25, %s2053_s24 }
   0xd   : > { %p417_p4 = scmp.eq.s32.totalorder %s1809_s29, 1  ;;  %p1810_p7 = scmp.ge.s32.totalorder %s2065_s27, 1 }
   0xe   : > { %s2220_s19 = scalar_select %p398_p1, %s2061_s26, %s400_s30  }
   0xf   : > { %p2222_p5 = por %p411_p2, %p410_p0  ;;  %p2226_p6 = por %p417_p4, %p416_p3 }
  0x10   : > { %3028 = sst [smem:[#allocation11_spill]] %s2220_s19  ;;  %p424_p8 = scmp.lt.s32.totalorder %s2065_s27, 3 }
  0x11   : > { %s3029_s1 = scalar_select %p2222_p5, 1, 0 }
  0x12   : > { %s3030_s20 = scalar_select %p2226_p6, 1, 0 }
  0x13   : > { %p3008_p9 = scmp.eq.s32.totalorder %s2205_s28, 0  ;;  %p2233_p10 = pnand %p1810_p7, %p424_p8 }
  0x14   : > { %3031 = sst [smem:[#allocation12_spill]] %s3030_s20  ;;  %s2067_s22 = smov [#allocation2]  }
  0x15   : > { %s3032_s21 = scalar_select %p2233_p10, 1, 0 }
  0x16   : > { %s440_s23 = sshll.u32 %s2067_s22, 4  ;;  %p1846_p11 = pneg %p2233_p10  ;;  %s441_s23 = int_to_ptr.vmem [resolvable:$true] %s440_s23 }
  0x17   : > { %s1971_s19 = scalar_lea.hbm %s2986_s2, 64 }
  0x18   : > { %p2241_p12 = pnand %p3008_p9, %p1846_p11  ;;  %p1972_p13 = scmp.ne.s32.totalorder %s2986_s2, %s1971_s19 }
  0x19   : > { %p1978_p3 = scmp.lt.u32.totalorder %s1971_s19, %s2986_s2 }
  0x1a   : > { %p1973_p0 = pneg %p2241_p12 }
  0x1c   : > { %p1974_p1 = pnand %p1973_p0, %p1972_p13 }
  0x1e   : > { %p1975_p2 = pneg %p1974_p1 }
  0x20   : > { %p1980_p4 = pnand %p1978_p3, %p1975_p2 }
  0x22   : > { %1983 = shalt.err (!%p1980_p4)
}
  0x23   : > { %s1984_s24 = scalar_lea.vmem %s441_s23, 64  ;;  %p1992_p9 = scmp.lt.s32.totalorder %s441_s23, %s441_s23 }
  0x24   : > { %p1985_p7 = scmp.ne.s32.totalorder %s441_s23, %s1984_s24  ;;  %p1993_p6 = scmp.lt.s32.totalorder %s1984_s24, %s1984_s24 }
  0x26   : > { %p1987_p8 = pnand %p1985_p7, %p1973_p0  ;;  %p1994_p5 = por %p1993_p6, %p1992_p9 }
  0x28   : > { %p1988_p11 = pneg %p1987_p8 }
  0x2a   : > { %p1995_p10 = pnand %p1994_p5, %p1988_p11 }
  0x2c   : > { %1998 = shalt.err (!%p1995_p10)
}
  0x2d   : > { %1849 = dma.hbm_to_vmem [thread:$0]  (!%p2241_p12), %s2986_s2, 64, %s441_s23, [#allocation3]  }
  0x2e   : > { %p3034_p13 = scmp.ne.s32.totalorder %s3032_s21, 0 }
  0x2f   : > { %p3035_p1 = scmp.eq.s32.totalorder (!%p3034_p13), %s2205_s28, 0 }
  0x30   : > { %503 = sbr.rel (%p3034_p13) target bundleno = 714 (0x2ca), region = 88 }
  0x37   : > { %2044 = dma.done.wait (%p3035_p1), [#allocation3], 64   ;;  %p3036_p0 = pmov %p3035_p1 }
  0x38   : > { %p555_p6 = scmp.lt.s32.totalorder %s2205_s28, 1  ;;  %v2068_v0 = vmov 0   ;;  %v2069_v1 = vmov 2   ;;  %s3037_s23 = sld [smem:[#allocation13_spill]]  ;;  %v588_v2 = vld [vmem:[#allocation2] sm:$0xf]  ;;  %v568_v33 = vlaneseq }
  0x39   : > { %2046 = vsyncadd (%p3036_p0), [#allocation3], 4294967232  ;;  %1915 = vset.pattern.permute.xlu1 %v2068_v0  ;;  %1917 = vset.pattern.permute.xlu0 %v2069_v1  ;;  %s2070_s30 = smov 34   ;;  %s2071_s18 = smov 32   ;;  %v2072_v5 = vmov 1   ;;  %v2074_v8 = vmov 4  }
  0x3a   : > { %s556_s24 = scalar_select %p555_p6, %s2205_s28, 1  ;;  %591 = vperm.xlu1 %1915, %v588_v2   ;;  %v620_v6 = vld [vmem:[#allocation2] sm:$0xf]  ;;  %v2076_v10 = vmov 3   ;;  %v2077_v12 = vmov 6   ;;  %v2078_v14 = vmov 5  }
  0x3b   : > { %s3021_s22 = smov 30   ;;  %v652_v7 = vld [vmem:[#allocation2] sm:$0xf]  ;;  %s3013_s26 = smov 2   ;;  %v2079_v16 = vmov 7   ;;  %v2081_v18 = vmov 8  }
  0x3c   : > { %s1838_s19 = sshll.u32 %s556_s24, 3  ;;  %v684_v9 = vld [vmem:[#allocation2] sm:$0xf]  ;;  %s3011_s0 = smov 126   ;;  %v2368_v36 = vshrl.u32 %v568_v33, 7  ;;  %v2370_v37 = vand.u32 127, %v568_v33 }
  0x3d   : > { %v756_v11 = vld [vmem:[#allocation2] sm:$0xf]  ;;  %s3019_s24 = smov 94   ;;  %s3041_s20 = smov 94  }
  0x3e   : > { %s2274_s29 = scalar_lea.vmem %s3037_s23, %s1838_s19  ;;  %1916 = vset.pattern.permute.xlu1 %v2072_v5  ;;  %v724_v13 = vld [vmem:[#allocation2] sm:$0xf]  ;;  %s3017_s19 = smov 98   ;;  %v2378_v40 = vsub.s32 0, %v2368_v36  ;;  %v2381_v41 = vsub.s32 1, %v2368_v36  ;;  %vm602_vm0 = vcmp.lt.s32.totalorder %v2370_v37, 32 }
  0x3f   : > { %v2277_v3 = vld [vmem:[%s2274_s29] sm:$0xff]  ;;  %s3015_s23 = smov 96   ;;  %vm570_vm1 = vcmp.lt.s32.totalorder %v2370_v37, 34  ;;  %vm634_vm2 = vcmp.lt.s32.totalorder %v2370_v37, 30  ;;  %vm666_vm3 = vcmp.lt.s32.totalorder %v2370_v37, 2  ;;  %vm706_vm4 = vcmp.lt.s32.totalorder %v2370_v37, 126 }
  0x40   : > { %564 = vrot.lane.b32.xlu0 %v2277_v3, %s2070_s30  ;;  %v2283_v4 = vcombine.high %v2277_v3, %v2277_v3  ;;  %598 = vrot.lane.b32.xlu1 %v2277_v3, %s2071_s18  ;;  %v788_v15 = vld [vmem:[#allocation2] sm:$0xf]  ;;  %vm738_vm5 = vcmp.lt.s32.totalorder %v2370_v37, 98  ;;  %vm770_vm6 = vcmp.lt.s32.totalorder %v2370_v37, 96  ;;  %vm802_vm7 = vcmp.lt.s32.totalorder %v2370_v37, 94  ;;  %s2089_s21 = smov 1  }
  0x41   : > { %v820_v17 = vld [vmem:[#allocation2] sm:$0xf]  ;;  %vm1235_vm8 = vcmp.lt.s32.totalorder %v2370_v37, 16  ;;  %vm1204_vm9 = vcmp.lt.s32.totalorder %v2370_v37, 17  ;;  %vm1265_vm10 = vcmp.lt.s32.totalorder %v2370_v37, 15  ;;  %vm1295_vm11 = vcmp.lt.s32.totalorder %v2370_v37, 1 }
  0x42   : > { %v830_v19 = vld [vmem:[%s2987_s3] sm:$0xff]  ;;  %vm1333_vm12 = vcmp.lt.s32.totalorder %v2370_v37, 127  ;;  %vm1363_vm13 = vcmp.lt.s32.totalorder %v2370_v37, 113  ;;  %vm1393_vm14 = vcmp.lt.s32.totalorder %v2370_v37, 112  ;;  %vm1423_vm15 = vcmp.lt.s32.totalorder %v2370_v37, 111  ;;  %p3046_p9 = scmp.ne.s32.totalorder %s3029_s1, 0 }
  0x43   : > { %v2329_v20 = vld [vmem:[%s2990_s6] sm:$0xff] }
  0x44   : > { %566 = vrot.lane.b32.xlu0 %v2283_v4, %s2070_s30  ;;  %623 = vperm.xlu1 %1916, %v620_v6   ;;  %v896_v21 = vld [vmem:[%s2988_s4] sm:$0xff] }
  0x45   : > { %v904_v22 = vld [vmem:[%s2989_s5] sm:$0xff] }
  0x46   : > { %v2361_v23 = vld [vmem:[%s2991_s7] sm:$0xff] }
  0x48   : > { %600 = vrot.lane.b32.xlu0 %v2283_v4, %s2071_s18  ;;  %632 = vrot.lane.b32.xlu1 %v2283_v4, %s3021_s22 }
  0x49   : > { %1919 = vset.pattern.permute.xlu1 %v2074_v8 }
  0x4c   : > { %630 = vrot.lane.b32.xlu0 %v2277_v3, %s3021_s22  ;;  %662 = vrot.lane.b32.xlu1 %v2277_v3, %s3013_s26  ;;  %s2086_s22 = smov 17  }
  0x50   : > { %655 = vperm.xlu0 %1917, %v652_v7   ;;  %664 = vrot.lane.b32.xlu1 %v2283_v4, %s3013_s26  ;;  %s3038_s26 = sld [smem:[#allocation14_spill]] }
  0x54   : > { %1918 = vset.pattern.permute.xlu0 %v2076_v10  ;;  %695 = vperm.xlu1 %1919, %v684_v9  }
  0x55   : > { %687 = vperm.xlu0 %1918, %v684_v9  }
  0x56   : > { %v1819_v39 = vld [vmem:[%s3038_s26 + $0x12] ss:$8 sm:$0x3] }
  0x57   : > { %v2392_v45 = vrot.slane %v1819_v39, %v2378_v40  ;;  %v2395_v46 = vrot.slane %v1819_v39, %v2381_v41 }
  0x58   : > { %1920 = vset.pattern.permute.xlu1 %v2078_v14 }
  0x59   : > { %1921 = vset.pattern.permute.xlu0 %v2077_v12  ;;  %727 = vperm.xlu1 %1920, %v724_v13  }
  0x5a   : > { %759 = vperm.xlu0 %1921, %v756_v11  }
  0x5d   : > { %702 = vrot.lane.b32.xlu1 %v2277_v3, %s3011_s0 }
  0x5e   : > { %1922 = vset.pattern.permute.xlu0 %v2079_v16  ;;  %1925 = vset.pattern.permute.xlu1 %v2072_v5 }
  0x5f   : > { %791 = vperm.xlu0 %1922, %v788_v15  }
  0x61   : > { %704 = vrot.lane.b32.xlu1 %v2283_v4, %s3011_s0  ;;  %s3039_s0 = smov %s3038_s26  ;;  %s3043_s26 = smov 126  }
  0x62   : > { %v1818_v43 = vld [vmem:[%s3039_s0 + $0x11] ss:$8 sm:$0x3]  ;;  %v1820_v44 = vld [vmem:[%s3039_s0 + $0x13] ss:$8 sm:$0x3] }
  0x63   : > { %1923 = vset.pattern.permute.xlu0 %v2081_v18  ;;  %v2403_v50 = vrot.slane %v1818_v43, %v2378_v40  ;;  %v2406_v51 = vrot.slane %v1818_v43, %v2381_v41  ;;  %v2409_v52 = vrot.slane %v1820_v44, %v2378_v40  ;;  %v1821_v53 = vld [vmem:[%s3039_s0 + $0x14] ss:$8 sm:$0x3]  ;;  %v2419_v57 = vrot.slane %v1820_v44, %v2381_v41 }
  0x64   : > { %823 = vperm.xlu0 %1923, %v820_v17   ;;  %v2429_v63 = vrot.slane %v1821_v53, %v2378_v40  ;;  %v2432_v2 = vrot.slane %v1821_v53, %v2381_v41 }
  0x65   : > { %734 = vrot.lane.b32.xlu1 %v2277_v3, %s3017_s19 }
  0x68   : > { %798 = vrot.lane.b32.xlu0 %v2277_v3, %s3019_s24 }
  0x69   : > { %1924 = vset.pattern.permute.xlu0 %v2068_v0  ;;  %736 = vrot.lane.b32.xlu1 %v2283_v4, %s3017_s19  ;;  %s3044_s19 = smov 98  }
  0x6c   : > { %833 = vperm.xlu0 %1924, %v830_v19  }
  0x6d   : > { %766 = vrot.lane.b32.xlu1 %v2277_v3, %s3015_s23 }
  0x70   : > { %1927 = vset.pattern.permute.xlu0 %v2076_v10 }
  0x71   : > { %881 = vperm.xlu0 %1927, %v830_v19   ;;  %768 = vrot.lane.b32.xlu1 %v2283_v4, %s3015_s23  ;;  %s3040_s23 = smov 30  }
  0x75   : > { %1929 = vset.pattern.permute.xlu0 %v2068_v0  ;;  %800 = vrot.lane.b32.xlu1 %v2283_v4, %s3019_s24  ;;  %s2087_s24 = smov 15  }
  0x76   : > { %925 = vperm.xlu0 %1929, %v2329_v20  }
  0x79   : > { %849 = vperm.xlu1 %1925, %v830_v19  }
  0x7a   : > { %1930 = vset.pattern.permute.xlu0 %v2072_v5 }
  0x7b   : > { %941 = vperm.xlu0 %1930, %v2329_v20  }
  0x7d   : > { %1926 = vset.pattern.permute.xlu1 %v2069_v1 }
  0x7e   : > { %865 = vperm.xlu1 %1926, %v830_v19  }
  0x7f   : > { %1931 = vset.pattern.permute.xlu0 %v2069_v1 }
  0x80   : > { %957 = vperm.xlu0 %1931, %v2329_v20  }
  0x82   : > { %1928 = vset.pattern.permute.xlu1 %v2068_v0 }
  0x83   : > { %899 = vperm.xlu1 %1928, %v896_v21  }
  0x84   : > { %1932 = vset.pattern.permute.xlu0 %v2076_v10 }
  0x85   : > { %973 = vperm.xlu0 %1932, %v2329_v20  }
  0x87   : > { %907 = vperm.xlu1 %1928, %v904_v22   ;;  %v1822_v22 = vld [vmem:[%s3039_s0 + $0x16] ss:$8 sm:$0x3] }
  0x88   : > { %v2449_v33 = vrot.slane %v1822_v22, %v2378_v40  ;;  %v2455_v43 = vrot.slane %v1822_v22, %v2381_v41 }
  0x89   : > { %1935 = vset.pattern.permute.xlu0 %v2077_v12 }
  0x8a   : > { %1013 = vperm.xlu0 %1935, %v2329_v20  }
  0x8b   : > { %1933 = vset.pattern.permute.xlu1 %v2074_v8 }
  0x8c   : > { %981 = vperm.xlu1 %1933, %v2329_v20  }
  0x8e   : > { %1936 = vset.pattern.permute.xlu0 %v2079_v16 }
  0x8f   : > { %1029 = vperm.xlu0 %1936, %v2329_v20  }
  0x90   : > { %1934 = vset.pattern.permute.xlu1 %v2078_v14 }
  0x91   : > { %997 = vperm.xlu1 %1934, %v2329_v20  }
  0x93   : > { %1937 = vset.pattern.permute.xlu0 %v2081_v18 }
  0x95   : > { %1939 = vset.pattern.permute.xlu1 %v2072_v5 }
  0x96   : > { %1071 = vperm.xlu1 %1939, %v2361_v23  }
  0x9a   : > { %1940 = vset.pattern.permute.xlu1 %v2069_v1 }
  0xb2   : > { %v565_v27 = vpop.permute.xlu0 %564 }
  0xb6   : > { %v567_v30 = vpop.permute.xlu0 %566 }
  0xb7   : > { %v571_v55 = vsel %vm570_vm1, %v565_v27, %v567_v30  ;;  %v572_v56 = vsel %vm570_vm1, %v567_v30, %v565_v27 }
  0xb8   : > { %v586_v6 = vmul.f32 %v2403_v50, %v572_v56  ;;  %v587_v7 = vmul.f32 %v2406_v51, %v571_v55 }
  0xb9   : > { %v592_v24 = vpop.permute.xlu1 %591 }
  0xba   : > { %v601_v32 = vpop.permute.xlu0 %600  ;;  %v594_v30 = vmul.f32 %v592_v24, %v586_v6 }
  0xbd   : > { %v599_v25 = vpop.permute.xlu1 %598 }
  0xbe   : > { %v631_v35 = vpop.permute.xlu0 %630  ;;  %v603_v48 = vsel %vm602_vm0, %v599_v25, %v601_v32  ;;  %v604_v49 = vsel %vm602_vm0, %v601_v32, %v599_v25  ;;  %v595_v32 = vmul.f32 %v592_v24, %v587_v7 }
  0xbf   : > { %v618_v58 = vmul.f32 %v2392_v45, %v604_v49  ;;  %v619_v59 = vmul.f32 %v2395_v46, %v603_v48 }
  0xc3   : > { %v624_v26 = vpop.permute.xlu1 %623 }
  0xc4   : > { %v626_v19 = vmul.f32 %v624_v26, %v618_v58  ;;  %v627_v21 = vmul.f32 %v624_v26, %v619_v59  ;;  %v1823_v26 = vld [vmem:[%s3039_s0 + $0x17] ss:$8 sm:$0x3] }
  0xc5   : > { %v2463_v55 = vrot.slane %v1823_v26, %v2378_v40  ;;  %v2466_v56 = vrot.slane %v1823_v26, %v2381_v41 }
  0xc6   : > { %v629_v39 = vadd.f32 %v627_v21, %v595_v32 }
  0xc7   : > { %v633_v28 = vpop.permute.xlu1 %632 }
  0xc8   : > { %v635_v60 = vsel %vm634_vm2, %v631_v35, %v633_v28  ;;  %v636_v61 = vsel %vm634_vm2, %v633_v28, %v631_v35  ;;  %v628_v35 = vadd.f32 %v626_v19, %v594_v30 }
  0xc9   : > { %v650_v15 = vmul.f32 %v2409_v52, %v636_v61  ;;  %v651_v17 = vmul.f32 %v2419_v57, %v635_v60  ;;  %v1824_v61 = vld [vmem:[%s3039_s0 + $0x20] ss:$8 sm:$0x3] }
  0xcb   : > { %v663_v29 = vpop.permute.xlu1 %662 }
  0xcf   : > { %v665_v31 = vpop.permute.xlu1 %664  ;;  %v656_v42 = vpop.permute.xlu0 %655 }
  0xd0   : > { %v667_v9 = vsel %vm666_vm3, %v663_v29, %v665_v31  ;;  %v668_v11 = vsel %vm666_vm3, %v665_v31, %v663_v29  ;;  %v658_v29 = vmul.f32 %v656_v42, %v650_v15  ;;  %v659_v31 = vmul.f32 %v656_v42, %v651_v17  ;;  %v1825_v17 = vld [vmem:[%s3039_s0 + $0x21] ss:$8 sm:$0x3] }
  0xd1   : > { %v682_v27 = vmul.f32 %v2429_v63, %v668_v11  ;;  %v683_v28 = vmul.f32 %v2432_v2, %v667_v9  ;;  %v2500_v30 = vrot.slane %v1825_v17, %v2381_v41 }
  0xd2   : > { %v660_v58 = vadd.f32 %v658_v29, %v628_v35  ;;  %v661_v59 = vadd.f32 %v659_v31, %v629_v39 }
  0xd3   : > { %v2366_v34 = vpop.permute.xlu1 %695 }
  0xd4   : > { %v688_v54 = vpop.permute.xlu0 %687  ;;  %v698_v11 = vmul.f32 %v2366_v34, %v2277_v3  ;;  %v699_v15 = vmul.f32 %v2366_v34, %v2283_v4 }
  0xd5   : > { %v690_v48 = vmul.f32 %v688_v54, %v682_v27  ;;  %v691_v49 = vmul.f32 %v688_v54, %v683_v28  ;;  %v2491_v27 = vrot.slane %v1824_v61, %v2381_v41  ;;  %v2497_v28 = vrot.slane %v1825_v17, %v2378_v40 }
  0xd7   : > { %v692_v7 = vadd.f32 %v690_v48, %v660_v58  ;;  %v693_v9 = vadd.f32 %v691_v49, %v661_v59 }
  0xd8   : > { %v2372_v38 = vpop.permute.xlu1 %727 }
  0xd9   : > { %v760_v13 = vpop.permute.xlu0 %759  ;;  %v700_v32 = vadd.f32 %v698_v11, %v692_v7  ;;  %v701_v29 = vadd.f32 %v699_v15, %v693_v9 }
  0xdc   : > { %v703_v47 = vpop.permute.xlu1 %702 }
  0xde   : > { %v792_v44 = vpop.permute.xlu0 %791 }
  0xe0   : > { %v705_v62 = vpop.permute.xlu1 %704 }
  0xe1   : > { %v707_v42 = vsel %vm706_vm4, %v703_v47, %v705_v62  ;;  %v708_v53 = vsel %vm706_vm4, %v705_v62, %v703_v47 }
  0xe2   : > { %v722_v47 = vmul.f32 %v2449_v33, %v707_v42  ;;  %v723_v62 = vmul.f32 %v2455_v43, %v708_v53 }
  0xe3   : > { %v824_v19 = vpop.permute.xlu0 %823 }
  0xe4   : > { %v735_v25 = vpop.permute.xlu1 %734  ;;  %v730_v3 = vmul.f32 %v2372_v38, %v722_v47  ;;  %v731_v4 = vmul.f32 %v2372_v38, %v723_v62 }
  0xe6   : > { %v732_v48 = vadd.f32 %v730_v3, %v700_v32  ;;  %v733_v49 = vadd.f32 %v731_v4, %v701_v29 }
  0xe7   : > { %v799_v42 = vpop.permute.xlu0 %798 }
  0xe8   : > { %v737_v24 = vpop.permute.xlu1 %736 }
  0xe9   : > { %v739_v60 = vsel %vm738_vm5, %v735_v25, %v737_v24  ;;  %v740_v54 = vsel %vm738_vm5, %v737_v24, %v735_v25  ;;  %v2488_v25 = vrot.slane %v1824_v61, %v2378_v40 }
  0xea   : > { %v754_v21 = vmul.f32 %v2463_v55, %v739_v60  ;;  %v755_v22 = vmul.f32 %v2466_v56, %v740_v54 }
  0xeb   : > { %v834_v17 = vpop.permute.xlu0 %833 }
  0xec   : > { %v767_v6 = vpop.permute.xlu1 %766  ;;  %v762_v35 = vmul.f32 %v760_v13, %v754_v21  ;;  %v763_v39 = vmul.f32 %v760_v13, %v755_v22  ;;  %v2518_v21 = vsub.s32 3, %v2368_v36 }
  0xee   : > { %v764_v61 = vadd.f32 %v762_v35, %v732_v48  ;;  %v765_v47 = vadd.f32 %v763_v39, %v733_v49 }
  0xf0   : > { %v769_v34 = vpop.permute.xlu1 %768 }
  0xf1   : > { %v771_v31 = vsel %vm770_vm6, %v767_v6, %v769_v34  ;;  %v772_v26 = vsel %vm770_vm6, %v769_v34, %v767_v6 }
  0xf2   : > { %v786_v24 = vmul.f32 %v2488_v25, %v771_v31  ;;  %v787_v38 = vmul.f32 %v2491_v27, %v772_v26 }
  0xf4   : > { %v794_v53 = vmul.f32 %v792_v44, %v786_v24  ;;  %v795_v58 = vmul.f32 %v792_v44, %v787_v38  ;;  %v801_v59 = vpop.permute.xlu1 %800  ;;  %v2515_v44 = vsub.s32 2, %v2368_v36 }
  0xf5   : > { %v803_v60 = vsel %vm802_vm7, %v799_v42, %v801_v59  ;;  %v804_v54 = vsel %vm802_vm7, %v801_v59, %v799_v42  ;;  %v882_v42 = vpop.permute.xlu0 %881 }
  0xf6   : > { %v818_v13 = vmul.f32 %v2497_v28, %v803_v60  ;;  %v819_v62 = vmul.f32 %v2500_v30, %v804_v54  ;;  %v796_v6 = vadd.f32 %v794_v53, %v764_v61  ;;  %v797_v7 = vadd.f32 %v795_v58, %v765_v47 }
  0xf8   : > { %v826_v9 = vmul.f32 %v824_v19, %v818_v13  ;;  %v827_v11 = vmul.f32 %v824_v19, %v819_v62  ;;  %v850_v15 = vpop.permute.xlu1 %849 }
  0xfa   : > { %v828_v22 = vadd.f32 %v826_v9, %v796_v6  ;;  %v829_v3 = vadd.f32 %v827_v11, %v797_v7 }
  0xfc   : > { %v855_v4 = vrot.slane %v828_v22, %v2381_v41  ;;  %v859_v34 = vrot.slane %v829_v3, %v2381_v41  ;;  %v839_v32 = vrot.slane %v828_v22, %v2378_v40  ;;  %v843_v29 = vrot.slane %v829_v3, %v2378_v40 }
  0xfd   : > { %v866_v31 = vpop.permute.xlu1 %865  ;;  %v871_v19 = vrot.slane %v828_v22, %v2515_v44  ;;  %v875_v26 = vrot.slane %v829_v3, %v2515_v44  ;;  %v887_v35 = vrot.slane %v828_v22, %v2518_v21  ;;  %v891_v39 = vrot.slane %v829_v3, %v2518_v21 }
  0xfe   : > { %v860_v24 = vmul.f32 %v855_v4, %v850_v15  ;;  %v861_v38 = vmul.f32 %v859_v34, %v850_v15  ;;  %v844_v48 = vmul.f32 %v839_v32, %v834_v17  ;;  %v845_v49 = vmul.f32 %v843_v29, %v834_v17  ;;  %v1221_v34 = vld [vmem:[%s2994_s10] sm:$0xff] }
  0xff   : > { %v876_v59 = vmul.f32 %v871_v19, %v866_v31  ;;  %v877_v60 = vmul.f32 %v875_v26, %v866_v31  ;;  %v892_v47 = vmul.f32 %v887_v35, %v882_v42  ;;  %v893_v13 = vmul.f32 %v891_v39, %v882_v42  ;;  %v2588_v32 = vld [vmem:[%s2995_s11] sm:$0xff]  ;;  %v926_v31 = vpop.permute.xlu0 %925 }
 0x100   : > { %v862_v53 = vadd.f32 %v860_v24, %v844_v48  ;;  %v863_v58 = vadd.f32 %v861_v38, %v845_v49 }
 0x102   : > { %v878_v54 = vadd.f32 %v876_v59, %v862_v53  ;;  %v879_v61 = vadd.f32 %v877_v60, %v863_v58  ;;  %v900_v62 = vpop.permute.xlu1 %899 }
 0x103   : > { %v942_v26 = vpop.permute.xlu0 %941 }
 0x104   : > { %v894_v6 = vadd.f32 %v892_v47, %v878_v54  ;;  %v895_v7 = vadd.f32 %v893_v13, %v879_v61 }
 0x106   : > { %v902_v9 = vmul.f32 %v900_v62, %v894_v6  ;;  %v903_v11 = vmul.f32 %v900_v62, %v895_v7  ;;  %v908_v22 = vpop.permute.xlu1 %907 }
 0x107   : > { %v958_v39 = vpop.permute.xlu0 %957 }
 0x108   : > { %v910_v3 = vadd.f32 %v908_v22, %v902_v9  ;;  %v911_v4 = vadd.f32 %v908_v22, %v903_v11 }
 0x10a   : > { %v2528_v15 = vmax.f32 %v910_v3, 0.0  ;;  %v2530_v17 = vmax.f32 %v911_v4, 0.0 }
 0x10b   : > { %v974_v48 = vpop.permute.xlu0 %973 }
 0x10c   : > { %916 = vrot.lane.b32.xlu1 %v2530_v17, %s2070_s30  ;;  %914 = vrot.lane.b32.xlu0 %v2528_v15, %s2070_s30  ;;  %s3042_s30 = smov 2  }
 0x10f   : > { %v1014_v42 = vpop.permute.xlu0 %1013 }
 0x110   : > { %932 = vrot.lane.b32.xlu1 %v2528_v15, %s2071_s18  ;;  %1045 = vperm.xlu0 %1937, %v2329_v20   ;;  %v1190_v20 = vld [vmem:[%s2993_s9] sm:$0xff] }
 0x113   : > { %v2616_v59 = vpop.permute.xlu0 %1029 }
 0x114   : > { %934 = vrot.lane.b32.xlu1 %v2530_v17, %s2071_s18  ;;  %1938 = vset.pattern.permute.xlu0 %v2068_v0 }
 0x115   : > { %1055 = vperm.xlu0 %1938, %v2361_v23  }
 0x118   : > { %948 = vrot.lane.b32.xlu1 %v2528_v15, %s3040_s23 }
 0x119   : > { %1036 = vrot.lane.b32.xlu0 %v2528_v15, %s3041_s20 }
 0x11a   : > { %1941 = vset.pattern.permute.xlu0 %v2076_v10 }
 0x11c   : > { %950 = vrot.lane.b32.xlu1 %v2530_v17, %s3040_s23  ;;  %s3045_s23 = smov 96  }
 0x11d   : > { %1103 = vperm.xlu0 %1941, %v2361_v23  }
 0x120   : > { %964 = vrot.lane.b32.xlu1 %v2528_v15, %s3042_s30 }
 0x121   : > { %1944 = vset.pattern.permute.xlu0 %v2077_v12 }
 0x122   : > { %1151 = vperm.xlu0 %1944, %v2361_v23  }
 0x124   : > { %966 = vrot.lane.b32.xlu1 %v2530_v17, %s3042_s30  ;;  %s2092_s30 = smov 112  }
 0x126   : > { %1947 = vset.pattern.permute.xlu0 %v2068_v0 }
 0x127   : > { %1193 = vperm.xlu0 %1947, %v1190_v20  }
 0x128   : > { %988 = vrot.lane.b32.xlu1 %v2528_v15, %s3043_s26 }
 0x12b   : > { %1949 = vset.pattern.permute.xlu0 %v2069_v1 }
 0x12c   : > { %990 = vrot.lane.b32.xlu1 %v2530_v17, %s3043_s26  ;;  %1284 = vperm.xlu0 %1949, %v1221_v34   ;;  %s2085_s26 = smov 16  }
 0x130   : > { %1004 = vrot.lane.b32.xlu1 %v2528_v15, %s3044_s19  ;;  %1951 = vset.pattern.permute.xlu0 %v2074_v8 }
 0x131   : > { %1322 = vperm.xlu0 %1951, %v1221_v34  }
 0x134   : > { %1006 = vrot.lane.b32.xlu1 %v2530_v17, %s3044_s19  ;;  %s2088_s19 = smov 111  }
 0x135   : > { %1953 = vset.pattern.permute.xlu0 %v2077_v12 }
 0x136   : > { %1382 = vperm.xlu0 %1953, %v1221_v34  }
 0x138   : > { %1020 = vrot.lane.b32.xlu1 %v2528_v15, %s3045_s23 }
 0x13a   : > { %1954 = vset.pattern.permute.xlu0 %v2079_v16 }
 0x13b   : > { %1412 = vperm.xlu0 %1954, %v1221_v34  }
 0x13c   : > { %1022 = vrot.lane.b32.xlu1 %v2530_v17, %s3045_s23  ;;  %s2091_s23 = smov 113  }
 0x13f   : > { %1955 = vset.pattern.permute.xlu0 %v2081_v18  ;;  %v1182_v18 = vld [vmem:[%s2992_s8] sm:$0xff] }
 0x140   : > { %1038 = vrot.lane.b32.xlu1 %v2530_v17, %s3041_s20  ;;  %1442 = vperm.xlu0 %1955, %v1221_v34   ;;  %s2093_s20 = smov [#allocation5]  }
 0x144   : > { %1087 = vperm.xlu1 %1940, %v2361_v23   ;;  %1958 = vset.pattern.permute.xlu0 %v2076_v10 }
 0x145   : > { %1500 = vperm.xlu0 %1958, %v2588_v32  }
 0x148   : > { %1942 = vset.pattern.permute.xlu1 %v2074_v8 }
 0x149   : > { %1119 = vperm.xlu1 %1942, %v2361_v23   ;;  %1959 = vset.pattern.permute.xlu0 %v2068_v0 }
 0x14a   : > { %1224 = vperm.xlu0 %1959, %v1221_v34  }
 0x14d   : > { %1943 = vset.pattern.permute.xlu1 %v2078_v14 }
 0x14e   : > { %1135 = vperm.xlu1 %1943, %v2361_v23  }
 0x152   : > { %1945 = vset.pattern.permute.xlu1 %v2079_v16 }
 0x153   : > { %1167 = vperm.xlu1 %1945, %v2361_v23   ;;  %v2607_v23 = vpop.permute.xlu1 %981 }
 0x157   : > { %1946 = vset.pattern.permute.xlu1 %v2068_v0  ;;  %v2611_v29 = vpop.permute.xlu1 %997 }
 0x158   : > { %1185 = vperm.xlu1 %1946, %v1182_v18  }
 0x15b   : > { %v2614_v19 = vpop.permute.xlu1 %1071 }
 0x15c   : > { %1948 = vset.pattern.permute.xlu1 %v2072_v5 }
 0x15d   : > { %1254 = vperm.xlu1 %1948, %v1221_v34  }
 0x161   : > { %1950 = vset.pattern.permute.xlu1 %v2076_v10 }
 0x162   : > { %1314 = vperm.xlu1 %1950, %v1221_v34  }
 0x166   : > { %1952 = vset.pattern.permute.xlu1 %v2078_v14 }
 0x167   : > { %1352 = vperm.xlu1 %1952, %v1221_v34  }
 0x16b   : > { %1956 = vset.pattern.permute.xlu1 %v2072_v5 }
 0x16c   : > { %1468 = vperm.xlu1 %1956, %v2588_v32  }
 0x170   : > { %1957 = vset.pattern.permute.xlu1 %v2069_v1 }
 0x171   : > { %1484 = vperm.xlu1 %1957, %v2588_v32  }
 0x175   : > { %1960 = vset.pattern.permute.xlu1 %v2074_v8 }
 0x17e   : > { %v917_v35 = vpop.permute.xlu1 %916  ;;  %v915_v54 = vpop.permute.xlu0 %914 }
 0x17f   : > { %v918_v13 = vsel %vm570_vm1, %v915_v54, %v917_v35  ;;  %v919_v62 = vsel %vm570_vm1, %v917_v35, %v915_v54 }
 0x180   : > { %v920_v3 = vmul.f32 %v919_v62, %v2403_v50  ;;  %v921_v4 = vmul.f32 %v918_v13, %v2406_v51 }
 0x182   : > { %v933_v24 = vpop.permute.xlu1 %932  ;;  %v928_v50 = vmul.f32 %v926_v31, %v920_v3 }
 0x186   : > { %v935_v38 = vpop.permute.xlu1 %934 }
 0x187   : > { %v936_v8 = vsel %vm602_vm0, %v933_v24, %v935_v38  ;;  %v937_v47 = vsel %vm602_vm0, %v935_v38, %v933_v24 }
 0x188   : > { %v938_v6 = vmul.f32 %v937_v47, %v2392_v45  ;;  %v939_v7 = vmul.f32 %v936_v8, %v2395_v46 }
 0x18a   : > { %v949_v49 = vpop.permute.xlu1 %948  ;;  %v944_v18 = vmul.f32 %v942_v26, %v938_v6  ;;  %v945_v35 = vmul.f32 %v942_v26, %v939_v7 }
 0x18c   : > { %v946_v8 = vadd.f32 %v944_v18, %v928_v50 }
 0x18e   : > { %v951_v53 = vpop.permute.xlu1 %950 }
 0x18f   : > { %v952_v9 = vsel %vm634_vm2, %v949_v49, %v951_v53  ;;  %v953_v11 = vsel %vm634_vm2, %v951_v53, %v949_v49  ;;  %v929_v53 = vmul.f32 %v926_v31, %v921_v4  ;;  %v1046_v13 = vpop.permute.xlu0 %1045  ;;  %v985_v4 = vmul.f32 %v2607_v23, %v2530_v17 }
 0x190   : > { %v954_v45 = vmul.f32 %v953_v11, %v2409_v52  ;;  %v955_v46 = vmul.f32 %v952_v9, %v2419_v57 }
 0x191   : > { %v947_v47 = vadd.f32 %v945_v35, %v929_v53 }
 0x192   : > { %v965_v58 = vpop.permute.xlu1 %964  ;;  %v960_v51 = vmul.f32 %v958_v39, %v954_v45  ;;  %v961_v54 = vmul.f32 %v958_v39, %v955_v46 }
 0x194   : > { %v962_v26 = vadd.f32 %v960_v51, %v946_v8  ;;  %v1056_v11 = vpop.permute.xlu0 %1055 }
 0x196   : > { %v967_v60 = vpop.permute.xlu1 %966 }
 0x197   : > { %v968_v20 = vsel %vm666_vm3, %v965_v58, %v967_v60  ;;  %v969_v34 = vsel %vm666_vm3, %v967_v60, %v965_v58 }
 0x198   : > { %v970_v38 = vmul.f32 %v969_v34, %v2429_v63  ;;  %v971_v49 = vmul.f32 %v968_v20, %v2432_v2  ;;  %v963_v63 = vadd.f32 %v961_v54, %v947_v47  ;;  %v1037_v17 = vpop.permute.xlu0 %1036 }
 0x19a   : > { %v989_v61 = vpop.permute.xlu1 %988  ;;  %v976_v58 = vmul.f32 %v974_v48, %v970_v38  ;;  %v977_v60 = vmul.f32 %v974_v48, %v971_v49 }
 0x19c   : > { %v978_v48 = vadd.f32 %v976_v58, %v962_v26  ;;  %v979_v9 = vadd.f32 %v977_v60, %v963_v63 }
 0x19e   : > { %v991_v22 = vpop.permute.xlu1 %990  ;;  %v987_v45 = vadd.f32 %v985_v4, %v979_v9 }
 0x19f   : > { %v992_v52 = vsel %vm706_vm4, %v989_v61, %v991_v22  ;;  %v993_v57 = vsel %vm706_vm4, %v991_v22, %v989_v61  ;;  %v984_v22 = vmul.f32 %v2607_v23, %v2528_v15 }
 0x1a0   : > { %v994_v39 = vmul.f32 %v992_v52, %v2449_v33  ;;  %v995_v6 = vmul.f32 %v993_v57, %v2455_v43 }
 0x1a1   : > { %v986_v43 = vadd.f32 %v984_v22, %v978_v48  ;;  %v1104_v22 = vpop.permute.xlu0 %1103 }
 0x1a2   : > { %v1005_v24 = vpop.permute.xlu1 %1004  ;;  %v1000_v20 = vmul.f32 %v2611_v29, %v994_v39  ;;  %v1001_v33 = vmul.f32 %v2611_v29, %v995_v6 }
 0x1a4   : > { %v1002_v23 = vadd.f32 %v1000_v20, %v986_v43 }
 0x1a6   : > { %v1007_v62 = vpop.permute.xlu1 %1006 }
 0x1a7   : > { %v1008_v2 = vsel %vm738_vm5, %v1005_v24, %v1007_v62  ;;  %v1009_v31 = vsel %vm738_vm5, %v1007_v62, %v1005_v24  ;;  %v1003_v24 = vadd.f32 %v1001_v33, %v987_v45  ;;  %v2690_v45 = vsub.s32 6, %v2368_v36 }
 0x1a8   : > { %v1010_v3 = vmul.f32 %v1008_v2, %v2463_v55  ;;  %v1011_v61 = vmul.f32 %v1009_v31, %v2466_v56 }
 0x1aa   : > { %v1021_v7 = vpop.permute.xlu1 %1020  ;;  %v1016_v56 = vmul.f32 %v1014_v42, %v1010_v3  ;;  %v1017_v18 = vmul.f32 %v1014_v42, %v1011_v61  ;;  %v2685_v3 = vsub.s32 4, %v2368_v36 }
 0x1ac   : > { %v1018_v51 = vadd.f32 %v1016_v56, %v1002_v23  ;;  %v1019_v42 = vadd.f32 %v1017_v18, %v1003_v24  ;;  %v2693_v18 = vsub.s32 5, %v2368_v36 }
 0x1ae   : > { %v1023_v34 = vpop.permute.xlu1 %1022 }
 0x1af   : > { %v1024_v46 = vsel %vm770_vm6, %v1021_v7, %v1023_v34  ;;  %v1025_v55 = vsel %vm770_vm6, %v1023_v34, %v1021_v7 }
 0x1b0   : > { %v1026_v15 = vmul.f32 %v1024_v46, %v2488_v25  ;;  %v1027_v35 = vmul.f32 %v1025_v55, %v2491_v27 }
 0x1b2   : > { %v1032_v29 = vmul.f32 %v2616_v59, %v1026_v15  ;;  %v1033_v38 = vmul.f32 %v2616_v59, %v1027_v35  ;;  %v1039_v49 = vpop.permute.xlu1 %1038 }
 0x1b3   : > { %v1040_v50 = vsel %vm802_vm7, %v1037_v17, %v1039_v49  ;;  %v1041_v53 = vsel %vm802_vm7, %v1039_v49, %v1037_v17 }
 0x1b4   : > { %v1042_v25 = vmul.f32 %v1040_v50, %v2497_v28  ;;  %v1043_v27 = vmul.f32 %v1041_v53, %v2500_v30  ;;  %v1034_v54 = vadd.f32 %v1032_v29, %v1018_v51  ;;  %v1035_v8 = vadd.f32 %v1033_v38, %v1019_v42  ;;  %v1152_v50 = vpop.permute.xlu0 %1151 }
 0x1b5   : > { %v2700_v51 = vsub.s32 7, %v2368_v36 }
 0x1b6   : > { %v1048_v47 = vmul.f32 %v1046_v13, %v1042_v25  ;;  %v1049_v62 = vmul.f32 %v1046_v13, %v1043_v27 }
 0x1b8   : > { %v1050_v58 = vadd.f32 %v1048_v47, %v1034_v54  ;;  %v1051_v60 = vadd.f32 %v1049_v62, %v1035_v8 }
 0x1ba   : > { %v1061_v59 = vrot.slane %v1050_v58, %v2378_v40  ;;  %v1065_v52 = vrot.slane %v1051_v60, %v2378_v40  ;;  %v1077_v57 = vrot.slane %v1050_v58, %v2381_v41  ;;  %v1081_v26 = vrot.slane %v1051_v60, %v2381_v41 }
 0x1bb   : > { %v1109_v13 = vrot.slane %v1050_v58, %v2518_v21  ;;  %v1113_v6 = vrot.slane %v1051_v60, %v2518_v21  ;;  %v1093_v7 = vrot.slane %v1050_v58, %v2515_v44  ;;  %v1097_v48 = vrot.slane %v1051_v60, %v2515_v44 }
 0x1bc   : > { %v1066_v63 = vmul.f32 %v1061_v59, %v1056_v11  ;;  %v1067_v2 = vmul.f32 %v1065_v52, %v1056_v11  ;;  %v1082_v28 = vmul.f32 %v1077_v57, %v2614_v19  ;;  %v1083_v30 = vmul.f32 %v1081_v26, %v2614_v19 }
 0x1bd   : > { %v1114_v4 = vmul.f32 %v1109_v13, %v1104_v22  ;;  %v1115_v20 = vmul.f32 %v1113_v6, %v1104_v22  ;;  %v1125_v34 = vrot.slane %v1050_v58, %v2685_v3  ;;  %v1129_v43 = vrot.slane %v1051_v60, %v2685_v3  ;;  %v1194_v13 = vpop.permute.xlu0 %1193 }
 0x1be   : > { %v1084_v31 = vadd.f32 %v1082_v28, %v1066_v63  ;;  %v1085_v39 = vadd.f32 %v1083_v30, %v1067_v2  ;;  %v1157_v24 = vrot.slane %v1050_v58, %v2690_v45  ;;  %v1161_v29 = vrot.slane %v1051_v60, %v2690_v45 }
 0x1bf   : > { %v1141_v38 = vrot.slane %v1050_v58, %v2693_v18  ;;  %v1145_v49 = vrot.slane %v1051_v60, %v2693_v18  ;;  %v1173_v62 = vrot.slane %v1050_v58, %v2700_v51  ;;  %v1177_v59 = vrot.slane %v1051_v60, %v2700_v51  ;;  %v1595_v58 = vld [vmem:[%s2998_s14] sm:$0xff] }
 0x1c0   : > { %v1162_v27 = vmul.f32 %v1157_v24, %v1152_v50  ;;  %v1163_v54 = vmul.f32 %v1161_v29, %v1152_v50  ;;  %v1579_v60 = vld [vmem:[%s2996_s12] sm:$0xff] }
 0x1c1   : > { %v1826_v29 = vld [vmem:[%s3039_s0 + $0x1] ss:$8 sm:$0x3]  ;;  %v1827_v50 = vld [vmem:[%s3039_s0 + $0x2] ss:$8 sm:$0x3] }
 0x1c3   : > { %v1088_v9 = vpop.permute.xlu1 %1087 }
 0x1c4   : > { %v1098_v61 = vmul.f32 %v1093_v7, %v1088_v9  ;;  %v1099_v11 = vmul.f32 %v1097_v48, %v1088_v9 }
 0x1c6   : > { %v1100_v19 = vadd.f32 %v1098_v61, %v1084_v31  ;;  %v1101_v33 = vadd.f32 %v1099_v11, %v1085_v39  ;;  %v2760_v11 = vpop.permute.xlu0 %1284 }
 0x1c8   : > { %v1120_v46 = vpop.permute.xlu1 %1119  ;;  %v1116_v55 = vadd.f32 %v1114_v4, %v1100_v19  ;;  %v1117_v56 = vadd.f32 %v1115_v20, %v1101_v33 }
 0x1c9   : > { %v1130_v15 = vmul.f32 %v1125_v34, %v1120_v46  ;;  %v1131_v35 = vmul.f32 %v1129_v43, %v1120_v46 }
 0x1ca   : > { %v2762_v4 = vpop.permute.xlu0 %1322 }
 0x1cb   : > { %v1132_v17 = vadd.f32 %v1130_v15, %v1116_v55  ;;  %v1133_v23 = vadd.f32 %v1131_v35, %v1117_v56 }
 0x1cd   : > { %v1136_v53 = vpop.permute.xlu1 %1135 }
 0x1ce   : > { %v1146_v42 = vmul.f32 %v1141_v38, %v1136_v53  ;;  %v1147_v25 = vmul.f32 %v1145_v49, %v1136_v53  ;;  %v2764_v20 = vpop.permute.xlu0 %1382  ;;  %v1207_v38 = vld [vmem:[%s3039_s0] ss:$8 sm:$0x3]  ;;  %v1244_v53 = vrot.slane %v1826_v29, %v2378_v40 }
 0x1d0   : > { %v1148_v8 = vadd.f32 %v1146_v42, %v1132_v17  ;;  %v1149_v47 = vadd.f32 %v1147_v25, %v1133_v23  ;;  %v1248_v42 = vrot.slane %v1826_v29, %v2381_v41  ;;  %v1212_v25 = vrot.slane %v1207_v38, %v2378_v40 }
 0x1d2   : > { %v1168_v52 = vpop.permute.xlu1 %1167  ;;  %v1164_v57 = vadd.f32 %v1162_v27, %v1148_v8  ;;  %v1165_v26 = vadd.f32 %v1163_v54, %v1149_v47  ;;  %v2766_v33 = vpop.permute.xlu0 %1412  ;;  %v1828_v8 = vld [vmem:[%s3039_s0 + $0x3] ss:$8 sm:$0x3]  ;;  %v1216_v47 = vrot.slane %v1207_v38, %v2381_v41 }
 0x1d3   : > { %v1178_v63 = vmul.f32 %v1173_v62, %v1168_v52  ;;  %v1179_v2 = vmul.f32 %v1177_v59, %v1168_v52  ;;  %v1274_v59 = vrot.slane %v1827_v50, %v2378_v40  ;;  %v1278_v52 = vrot.slane %v1827_v50, %v2381_v41 }
 0x1d5   : > { %v1180_v28 = vadd.f32 %v1178_v63, %v1164_v57  ;;  %v1181_v30 = vadd.f32 %v1179_v2, %v1165_v26 }
 0x1d6   : > { %v2770_v43 = vpop.permute.xlu0 %1442 }
 0x1d7   : > { %v1186_v31 = vpop.permute.xlu1 %1185 }
 0x1d8   : > { %v1188_v36 = vmul.f32 %v1186_v31, %v1180_v28  ;;  %v1189_v39 = vmul.f32 %v1186_v31, %v1181_v30 }
 0x1da   : > { %v1196_v6 = vadd.f32 %v1194_v13, %v1188_v36  ;;  %v1197_v7 = vadd.f32 %v1194_v13, %v1189_v39  ;;  %v2774_v56 = vpop.permute.xlu0 %1500  ;;  %v1304_v36 = vrot.slane %v1828_v8, %v2378_v40  ;;  %v1308_v39 = vrot.slane %v1828_v8, %v2381_v41 }
 0x1dc   : > { %v2704_v48 = vmax.f32 %v1196_v6, 0.0  ;;  %v2706_v9 = vmax.f32 %v1197_v7, 0.0 }
 0x1de   : > { %1233 = vrot.lane.b32.xlu0 %v2706_v9, %s2085_s26  ;;  %1200 = vrot.lane.b32.xlu1 %v2704_v48, %s2086_s22  ;;  %v1225_v35 = vpop.permute.xlu0 %1224 }
 0x1e2   : > { %1261 = vrot.lane.b32.xlu0 %v2704_v48, %s2087_s24  ;;  %1202 = vrot.lane.b32.xlu1 %v2706_v9, %s2086_s22 }
 0x1e6   : > { %1452 = vperm.xlu0 %1959, %v2588_v32   ;;  %1231 = vrot.lane.b32.xlu1 %v2704_v48, %s2085_s26 }
 0x1ea   : > { %1419 = vrot.lane.b32.xlu0 %v2704_v48, %s2088_s19  ;;  %1516 = vperm.xlu1 %1960, %v2588_v32  }
 0x1ee   : > { %1961 = vset.pattern.permute.xlu1 %v2078_v14  ;;  %1598 = vperm.xlu0 %1959, %v1595_v58   ;;  %v1709_v14 = vld [vmem:[%s3000_s16] sm:$0xff] }
 0x1ef   : > { %1532 = vperm.xlu1 %1961, %v2588_v32  }
 0x1f2   : > { %1964 = vset.pattern.permute.xlu0 %v2069_v1  ;;  %v1701_v1 = vld [vmem:[%s2999_s15] sm:$0xff] }
 0x1f3   : > { %1263 = vrot.lane.b32.xlu1 %v2706_v9, %s2087_s24  ;;  %1650 = vperm.xlu0 %1964, %v1595_v58   ;;  %s2090_s24 = smov 127  }
 0x1f4   : > { %1962 = vset.pattern.permute.xlu1 %v2072_v5  ;;  %v1587_v5 = vld [vmem:[%s2997_s13] sm:$0xff] }
 0x1f7   : > { %1291 = vrot.lane.b32.xlu1 %v2704_v48, %s2089_s21  ;;  %1967 = vset.pattern.permute.xlu0 %v2068_v0 }
 0x1f8   : > { %1582 = vperm.xlu0 %1967, %v1579_v60  }
 0x1fb   : > { %1293 = vrot.lane.b32.xlu1 %v2706_v9, %s2089_s21 }
 0x1fc   : > { %1712 = vperm.xlu0 %1967, %v1709_v14  }
 0x1ff   : > { %1329 = vrot.lane.b32.xlu1 %v2704_v48, %s2090_s24 }
 0x203   : > { %1331 = vrot.lane.b32.xlu1 %v2706_v9, %s2090_s24 }
 0x207   : > { %1359 = vrot.lane.b32.xlu1 %v2704_v48, %s2091_s23 }
 0x20b   : > { %1361 = vrot.lane.b32.xlu1 %v2706_v9, %s2091_s23 }
 0x20f   : > { %1389 = vrot.lane.b32.xlu1 %v2704_v48, %s2092_s30 }
 0x213   : > { %1391 = vrot.lane.b32.xlu1 %v2706_v9, %s2092_s30 }
 0x217   : > { %1624 = vperm.xlu1 %1962, %v1595_v58  }
 0x21b   : > { %1421 = vrot.lane.b32.xlu1 %v2706_v9, %s2088_s19  ;;  %s1839_s19 = sshll.u32 %s2205_s28, 8 }
 0x21c   : > { %1963 = vset.pattern.permute.xlu1 %v2077_v12  ;;  %v1255_v12 = vpop.permute.xlu1 %1254  ;;  %s2940_s30 = scalar_lea.hbm %s3001_s17, %s1839_s19 }
 0x21f   : > { %1548 = vperm.xlu1 %1963, %v2588_v32  }
 0x220   : > { %v2752_v61 = vpop.permute.xlu1 %1314 }
 0x223   : > { %1965 = vset.pattern.permute.xlu1 %v2079_v16 }
 0x224   : > { %1564 = vperm.xlu1 %1965, %v2588_v32   ;;  %v2754_v16 = vpop.permute.xlu1 %1352 }
 0x228   : > { %1966 = vset.pattern.permute.xlu1 %v2076_v10  ;;  %v2756_v32 = vpop.permute.xlu1 %1468 }
 0x229   : > { %1676 = vperm.xlu1 %1966, %v1595_v58  }
 0x22c   : > { %v2758_v10 = vpop.permute.xlu1 %1484 }
 0x22d   : > { %1968 = vset.pattern.permute.xlu1 %v2068_v0 }
 0x22e   : > { %1704 = vperm.xlu1 %1968, %v1701_v1   ;;  %v1829_v1 = vld [vmem:[%s3039_s0 + $0x5] ss:$8 sm:$0x3] }
 0x232   : > { %1590 = vperm.xlu1 %1968, %v1587_v5   ;;  %v1830_v5 = vld [vmem:[%s3039_s0 + $0x6] ss:$8 sm:$0x3] }
 0x233   : > { %v1372_v29 = vrot.slane %v1830_v5, %v2378_v40  ;;  %v1376_v8 = vrot.slane %v1830_v5, %v2381_v41 }
 0x250   : > { %v1201_v22 = vpop.permute.xlu1 %1200  ;;  %v1234_v24 = vpop.permute.xlu0 %1233 }
 0x254   : > { %v1203_v0 = vpop.permute.xlu1 %1202  ;;  %v1262_v62 = vpop.permute.xlu0 %1261 }
 0x255   : > { %v1205_v26 = vsel %vm1204_vm9, %v1201_v22, %v1203_v0  ;;  %v1206_v63 = vsel %vm1204_vm9, %v1203_v0, %v1201_v22 }
 0x256   : > { %v1219_v7 = vmul.f32 %v1212_v25, %v1206_v63  ;;  %v1220_v58 = vmul.f32 %v1216_v47, %v1205_v26 }
 0x258   : > { %v1232_v19 = vpop.permute.xlu1 %1231  ;;  %v1227_v38 = vmul.f32 %v1225_v35, %v1219_v7  ;;  %v1228_v50 = vmul.f32 %v1225_v35, %v1220_v58  ;;  %v1832_v7 = vld [vmem:[%s3039_s0 + $0x10] ss:$8 sm:$0x3]  ;;  %v1325_v58 = vmul.f32 %v2762_v4, %v2704_v48 }
 0x259   : > { %v1236_v27 = vsel %vm1235_vm8, %v1232_v19, %v1234_v24  ;;  %v1237_v54 = vsel %vm1235_vm8, %v1234_v24, %v1232_v19  ;;  %v1432_v48 = vrot.slane %v1832_v7, %v2378_v40 }
 0x25a   : > { %v1251_v30 = vmul.f32 %v1244_v53, %v1237_v54  ;;  %v1252_v31 = vmul.f32 %v1248_v42, %v1236_v27 }
 0x25c   : > { %v1257_v0 = vmul.f32 %v1255_v12, %v1251_v30  ;;  %v1258_v19 = vmul.f32 %v1255_v12, %v1252_v31  ;;  %v1831_v12 = vld [vmem:[%s3039_s0 + $0x7] ss:$8 sm:$0x3] }
 0x25e   : > { %v1259_v35 = vadd.f32 %v1257_v0, %v1227_v38  ;;  %v1260_v47 = vadd.f32 %v1258_v19, %v1228_v50 }
 0x269   : > { %v2768_v34 = vpop.permute.xlu1 %1516 }
 0x26e   : > { %v2772_v46 = vpop.permute.xlu1 %1532 }
 0x272   : > { %v1264_v55 = vpop.permute.xlu1 %1263 }
 0x273   : > { %v1266_v2 = vsel %vm1265_vm10, %v1262_v62, %v1264_v55  ;;  %v1267_v28 = vsel %vm1265_vm10, %v1264_v55, %v1262_v62  ;;  %v2822_v62 = vpop.permute.xlu0 %1452 }
 0x274   : > { %v1281_v60 = vmul.f32 %v1274_v59, %v1267_v28  ;;  %v1282_v14 = vmul.f32 %v1278_v52, %v1266_v2 }
 0x276   : > { %v1292_v15 = vpop.permute.xlu1 %1291  ;;  %v1287_v53 = vmul.f32 %v2760_v11, %v1281_v60  ;;  %v1288_v42 = vmul.f32 %v2760_v11, %v1282_v14  ;;  %v1326_v60 = vmul.f32 %v2762_v4, %v2706_v9  ;;  %v2844_v14 = vld [vmem:[%s2274_s29] sm:$0xff]  ;;  %v1436_v9 = vrot.slane %v1832_v7, %v2381_v41  ;;  %s552_s29 = sand.u32 1, %s2057_s25  }
 0x277   : > { %v1420_v5 = vpop.permute.xlu0 %1419  ;;  %v1634_v50 = vrot.slane %v2844_v14, %v2693_v18  ;;  %s1815_s21 = sshll.u32 %s552_s29, 4  ;;  %s1724_s28 = scalar_lea.sflag [#allocation4], %s552_s29 }
 0x278   : > { %v1289_v63 = vadd.f32 %v1287_v53, %v1259_v35  ;;  %v1290_v2 = vadd.f32 %v1288_v42, %v1260_v47  ;;  %v1656_v53 = vrot.slane %v2844_v14, %v2515_v44  ;;  %v1660_v42 = vrot.slane %v2844_v14, %v2690_v45  ;;  %s554_s26 = scalar_lea.vmem [#allocation5], %s1815_s21  ;;  %s2003_s21 = sshll.u32 %s2093_s20, 4  ;;  %s2004_s21 = int_to_ptr.vmem [resolvable:$false] %s2003_s21 }
 0x279   : > { %s1738_s22 = sshll.u32 %s554_s26, 4  ;;  %s2005_s24 = scalar_lea.vmem %s2004_s21, 512  ;;  %s2942_s22 = int_to_ptr.vmem [resolvable:$true] %s1738_s22 }
 0x27a   : > { %v1294_v17 = vpop.permute.xlu1 %1293  ;;  %s1999_s18 = scalar_lea.vmem %s2942_s22, 256  ;;  %p2006_p2 = scmp.lt.s32.totalorder %s2942_s22, %s2004_s21 }
 0x27b   : > { %v1296_v13 = vsel %vm1295_vm11, %v1292_v15, %v1294_v17  ;;  %v1297_v6 = vsel %vm1295_vm11, %v1294_v17, %v1292_v15  ;;  %v1342_v15 = vrot.slane %v1829_v1, %v2378_v40  ;;  %v1346_v17 = vrot.slane %v1829_v1, %v2381_v41  ;;  %p2000_p5 = scmp.ne.s32.totalorder %s2942_s22, %s1999_s18  ;;  %p2007_p3 = scmp.lt.s32.totalorder %s2005_s24, %s1999_s18 }
 0x27c   : > { %v1311_v55 = vmul.f32 %v1304_v36, %v1297_v6  ;;  %v1312_v24 = vmul.f32 %v1308_v39, %v1296_v13  ;;  %v1604_v1 = vrot.slane %v2844_v14, %v2378_v40 }
 0x27d   : > { %p2001_p10 = pnand %p2000_p5, %p3046_p9  ;;  %p2008_p4 = por %p2007_p3, %p2006_p2 }
 0x27e   : > { %v1330_v23 = vpop.permute.xlu1 %1329  ;;  %v1317_v11 = vmul.f32 %v2752_v61, %v1311_v55  ;;  %v1318_v59 = vmul.f32 %v2752_v61, %v1312_v24  ;;  %v1614_v35 = vrot.slane %v1604_v1, %v2378_v40 }
 0x27f   : > { %p2002_p12 = pneg %p2001_p10 }
 0x280   : > { %v1319_v39 = vadd.f32 %v1317_v11, %v1289_v63  ;;  %v1320_v13 = vadd.f32 %v1318_v59, %v1290_v2  ;;  %v1644_v2 = vrot.slane %v1634_v50, %v2381_v41 }
 0x281   : > { %p2009_p7 = pnand %p2008_p4, %p2002_p12 }
 0x282   : > { %v1332_v49 = vpop.permute.xlu1 %1331  ;;  %v1327_v4 = vadd.f32 %v1325_v58, %v1319_v39 }
 0x283   : > { %v1334_v27 = vsel %vm1333_vm12, %v1330_v23, %v1332_v49  ;;  %v1335_v54 = vsel %vm1333_vm12, %v1332_v49, %v1330_v23  ;;  %v1402_v23 = vrot.slane %v1831_v12, %v2378_v40  ;;  %v1406_v49 = vrot.slane %v1831_v12, %v2381_v41 }
 0x284   : > { %v1349_v28 = vmul.f32 %v1342_v15, %v1334_v27  ;;  %v1350_v30 = vmul.f32 %v1346_v17, %v1335_v54  ;;  %v1608_v15 = vrot.slane %v2844_v14, %v2685_v3  ;;  %v1328_v17 = vadd.f32 %v1326_v60, %v1320_v13  ;;  %v1599_v27 = vpop.permute.xlu0 %1598 }
 0x285   : > { %v1682_v13 = vrot.slane %v2844_v14, %v2518_v21 }
 0x286   : > { %v1360_v57 = vpop.permute.xlu1 %1359  ;;  %v1356_v0 = vmul.f32 %v2754_v16, %v1350_v30  ;;  %v1618_v47 = vrot.slane %v1608_v15, %v2378_v40 }
 0x288   : > { %v1358_v12 = vadd.f32 %v1356_v0, %v1328_v17  ;;  %v1620_v7 = vmul.f32 %v1618_v47, %v1599_v27 }
 0x28a   : > { %v1362_v22 = vpop.permute.xlu1 %1361 }
 0x28b   : > { %v1364_v52 = vsel %vm1363_vm13, %v1360_v57, %v1362_v22  ;;  %v1365_v26 = vsel %vm1363_vm13, %v1362_v22, %v1360_v57  ;;  %v1355_v22 = vmul.f32 %v2754_v16, %v1349_v28  ;;  %v1630_v16 = vrot.slane %v2844_v14, %v2381_v41 }
 0x28c   : > { %v1379_v6 = vmul.f32 %v1372_v29, %v1364_v52  ;;  %v1380_v57 = vmul.f32 %v1376_v8, %v1365_v26  ;;  %v1670_v28 = vrot.slane %v1660_v42, %v2515_v44 }
 0x28d   : > { %v1640_v63 = vrot.slane %v1630_v16, %v2381_v41 }
 0x28e   : > { %v1390_v25 = vpop.permute.xlu1 %1389  ;;  %v1385_v29 = vmul.f32 %v2764_v20, %v1379_v6  ;;  %v1386_v38 = vmul.f32 %v2764_v20, %v1380_v57  ;;  %v1686_v6 = vrot.slane %v2844_v14, %v2700_v51  ;;  %v1619_v57 = vmul.f32 %v1614_v35, %v1599_v27 }
 0x28f   : > { %v1692_v27 = vrot.slane %v1682_v13, %v2518_v21 }
 0x290   : > { %v1388_v26 = vadd.f32 %v1386_v38, %v1358_v12 }
 0x292   : > { %v1392_v31 = vpop.permute.xlu1 %1391 }
 0x293   : > { %v1394_v36 = vsel %vm1393_vm14, %v1390_v25, %v1392_v31  ;;  %v1395_v61 = vsel %vm1393_vm14, %v1392_v31, %v1390_v25  ;;  %v1357_v25 = vadd.f32 %v1355_v22, %v1327_v4 }
 0x294   : > { %v1409_v19 = vmul.f32 %v1402_v23, %v1394_v36  ;;  %v1410_v55 = vmul.f32 %v1406_v49, %v1395_v61  ;;  %v1651_v36 = vpop.permute.xlu0 %1650 }
 0x295   : > { %v1387_v52 = vadd.f32 %v1385_v29, %v1357_v25  ;;  %v1672_v0 = vmul.f32 %v1670_v28, %v1651_v36 }
 0x296   : > { %v1625_v24 = vpop.permute.xlu1 %1624  ;;  %v1415_v54 = vmul.f32 %v2766_v33, %v1409_v19  ;;  %v1416_v8 = vmul.f32 %v2766_v33, %v1410_v55  ;;  %v1666_v33 = vrot.slane %v1656_v53, %v2515_v44 }
 0x297   : > { %v1645_v1 = vmul.f32 %v1640_v63, %v1625_v24 }
 0x298   : > { %v1417_v30 = vadd.f32 %v1415_v54, %v1387_v52  ;;  %v1418_v31 = vadd.f32 %v1416_v8, %v1388_v26  ;;  %v1671_v22 = vmul.f32 %v1666_v33, %v1651_v36  ;;  %v1696_v54 = vrot.slane %v1686_v6, %v2518_v21 }
 0x299   : > { %v1647_v38 = vadd.f32 %v1645_v1, %v1619_v57 }
 0x29a   : > { %v1422_v20 = vpop.permute.xlu1 %1421 }
 0x29b   : > { %v1424_v11 = vsel %vm1423_vm15, %v1420_v5, %v1422_v20  ;;  %v1425_v59 = vsel %vm1423_vm15, %v1422_v20, %v1420_v5  ;;  %v1646_v5 = vmul.f32 %v1644_v2, %v1625_v24 }
 0x29c   : > { %v1439_v23 = vmul.f32 %v1432_v48, %v1424_v11  ;;  %v1440_v49 = vmul.f32 %v1436_v9, %v1425_v59  ;;  %v1673_v11 = vadd.f32 %v1671_v22, %v1647_v38 }
 0x29d   : > { %v1648_v16 = vadd.f32 %v1646_v5, %v1620_v7 }
 0x29e   : > { %v1445_v61 = vmul.f32 %v2770_v43, %v1439_v23  ;;  %v1446_v37 = vmul.f32 %v2770_v43, %v1440_v49  ;;  %v1549_v39 = vpop.permute.xlu1 %1548 }
 0x29f   : > { %v1674_v59 = vadd.f32 %v1672_v0, %v1648_v16 }
 0x2a0   : > { %v2883_v58 = vadd.f32 %v1445_v61, %v1417_v30  ;;  %v2885_v60 = vadd.f32 %v1446_v37, %v1418_v31  ;;  %v1583_v61 = vpop.permute.xlu0 %1582 }
 0x2a2   : > { %v1458_v43 = vrot.slane %v2883_v58, %v2378_v40  ;;  %v1462_v19 = vrot.slane %v2885_v60, %v2378_v40  ;;  %v1474_v55 = vrot.slane %v2883_v58, %v2381_v41  ;;  %v1478_v14 = vrot.slane %v2885_v60, %v2381_v41 }
 0x2a3   : > { %v1490_v15 = vrot.slane %v2883_v58, %v2515_v44  ;;  %v1494_v24 = vrot.slane %v2885_v60, %v2515_v44  ;;  %v1506_v48 = vrot.slane %v2883_v58, %v2518_v21  ;;  %v1510_v9 = vrot.slane %v2885_v60, %v2518_v21  ;;  %v1565_v4 = vpop.permute.xlu1 %1564 }
 0x2a4   : > { %v1463_v40 = vmul.f32 %v1458_v43, %v2822_v62  ;;  %v1464_v17 = vmul.f32 %v1462_v19, %v2822_v62  ;;  %v1479_v29 = vmul.f32 %v1474_v55, %v2756_v32  ;;  %v1480_v41 = vmul.f32 %v1478_v14, %v2756_v32 }
 0x2a5   : > { %v1495_v50 = vmul.f32 %v1490_v15, %v2758_v10  ;;  %v1496_v44 = vmul.f32 %v1494_v24, %v2758_v10  ;;  %v1522_v25 = vrot.slane %v2883_v58, %v2685_v3  ;;  %v1526_v12 = vrot.slane %v2885_v60, %v2685_v3 }
 0x2a6   : > { %v1481_v53 = vadd.f32 %v1479_v29, %v1463_v40  ;;  %v1482_v42 = vadd.f32 %v1480_v41, %v1464_v17  ;;  %v1538_v62 = vrot.slane %v2883_v58, %v2693_v18  ;;  %v1542_v32 = vrot.slane %v2885_v60, %v2693_v18 }
 0x2a7   : > { %v1511_v20 = vmul.f32 %v1506_v48, %v2774_v56  ;;  %v1512_v35 = vmul.f32 %v1510_v9, %v2774_v56  ;;  %v1554_v3 = vrot.slane %v2883_v58, %v2690_v45  ;;  %v1558_v52 = vrot.slane %v2885_v60, %v2690_v45 }
 0x2a8   : > { %v1497_v8 = vadd.f32 %v1495_v50, %v1481_v53  ;;  %v1498_v10 = vadd.f32 %v1496_v44, %v1482_v42  ;;  %v1677_v47 = vpop.permute.xlu1 %1676  ;;  %v1527_v23 = vmul.f32 %v1522_v25, %v2768_v34  ;;  %v1528_v21 = vmul.f32 %v1526_v12, %v2768_v34 }
 0x2a9   : > { %v1543_v49 = vmul.f32 %v1538_v62, %v2772_v46  ;;  %v1544_v56 = vmul.f32 %v1542_v32, %v2772_v46  ;;  %v1697_v63 = vmul.f32 %v1692_v27, %v1677_v47  ;;  %v1698_v2 = vmul.f32 %v1696_v54, %v1677_v47 }
 0x2aa   : > { %v1513_v18 = vadd.f32 %v1511_v20, %v1497_v8  ;;  %v1514_v26 = vadd.f32 %v1512_v35, %v1498_v10  ;;  %v1570_v30 = vrot.slane %v2883_v58, %v2700_v51  ;;  %v1574_v45 = vrot.slane %v2885_v60, %v2700_v51  ;;  %v1713_v60 = vpop.permute.xlu0 %1712 }
 0x2ab   : > { %v1559_v31 = vmul.f32 %v1554_v3, %v1549_v39  ;;  %v1560_v36 = vmul.f32 %v1558_v52, %v1549_v39  ;;  %v1699_v13 = vadd.f32 %v1697_v63, %v1673_v11  ;;  %v1700_v6 = vadd.f32 %v1698_v2, %v1674_v59 }
 0x2ac   : > { %v1529_v33 = vadd.f32 %v1527_v23, %v1513_v18  ;;  %v1530_v28 = vadd.f32 %v1528_v21, %v1514_v26  ;;  %v1575_v1 = vmul.f32 %v1570_v30, %v1565_v4  ;;  %v1576_v5 = vmul.f32 %v1574_v45, %v1565_v4 }
 0x2ad   : > { %v1705_v46 = vpop.permute.xlu1 %1704 }
 0x2ae   : > { %v1545_v34 = vadd.f32 %v1543_v49, %v1529_v33  ;;  %v1546_v37 = vadd.f32 %v1544_v56, %v1530_v28  ;;  %v1707_v0 = vmul.f32 %v1705_v46, %v1699_v13  ;;  %v1708_v51 = vmul.f32 %v1705_v46, %v1700_v6 }
 0x2b0   : > { %v1561_v57 = vadd.f32 %v1559_v31, %v1545_v34  ;;  %v1562_v7 = vadd.f32 %v1560_v36, %v1546_v37  ;;  %v1715_v55 = vadd.f32 %v1713_v60, %v1707_v0  ;;  %v1716_v14 = vadd.f32 %v1713_v60, %v1708_v51 }
 0x2b1   : > { %v1591_v19 = vpop.permute.xlu1 %1590 }
 0x2b2   : > { %v1577_v58 = vadd.f32 %v1575_v1, %v1561_v57  ;;  %v1578_v22 = vadd.f32 %v1576_v5, %v1562_v7 }
 0x2b4   : > { %v1585_v39 = vmul.f32 %v1583_v61, %v1577_v58  ;;  %v1586_v43 = vmul.f32 %v1583_v61, %v1578_v22 }
 0x2b6   : > { %v1593_v15 = vadd.f32 %v1591_v19, %v1585_v39  ;;  %v1594_v24 = vadd.f32 %v1591_v19, %v1586_v43 }
 0x2b8   : > { %v1717_v48 = vadd.f32 %v1715_v55, %v1593_v15  ;;  %v1718_v9 = vadd.f32 %v1716_v14, %v1594_v24 }
 0x2ba   : > { %v1719_v4 = vmax.f32 %v1717_v48, 0.0  ;;  %v1720_v40 = vmax.f32 %v1718_v9, 0.0 }
 0x2bc   : > { %1721 = vst [vmem:[%s554_s26] sm:$0xff] %v1719_v4  ;;  %1722 = vst [vmem:[%s554_s26 + $0x8] sm:$0xff] %v1720_v40 }
 0x2bd   : > { %2012 = shalt.err (!%p2009_p7)
}
 0x2be   : > { %s2013_s29 = scalar_lea.hbm %s2940_s30, 256  ;;  %s2017_s23 = scalar_lea.hbm %s3001_s17, 512 }
 0x2bf   : > { %p2014_p8 = scmp.ne.s32.totalorder %s2940_s30, %s2013_s29  ;;  %p2018_p1 = scmp.lt.u32.totalorder %s2940_s30, %s3001_s17 }
 0x2c0   : > { %p2019_p0 = scmp.lt.u32.totalorder %s2017_s23, %s2013_s29  ;;  %p2021_p5 = scmp.lt.u32.totalorder %s2013_s29, %s2940_s30 }
 0x2c1   : > { %p2015_p11 = pnand %p2014_p8, %p3046_p9 }
 0x2c2   : > { %p2020_p6 = por %p2019_p0, %p2018_p1 }
 0x2c3   : > { %p2016_p13 = pneg %p2015_p11 }
 0x2c4   : > { %p2022_p10 = por %p2021_p5, %p2020_p6 }
 0x2c6   : > { %p2023_p12 = pnand %p2022_p10, %p2016_p13 }
 0x2c8   : > { %2026 = shalt.err (!%p2023_p12)
}
 0x2c9   : > { %1844 = dma.vmem_to_hbm [thread:$0]  (%p3046_p9), %s2942_s22, 256, %s2940_s30, %s1724_s28  }
 0x2ca PF: > { %s3047_s18 = sld [smem:[#allocation8_spill]]  ;;  %s3048_s24 = sld [smem:[#allocation12_spill]] }
 0x2cb   : > { %p1856_p2 = scmp.ge.s32.totalorder %s2065_s27, 2 }
 0x2d0   : > { %s1750_s19 = sand.u32 1, %s3047_s18   ;;  %p3049_p3 = scmp.ne.s32.totalorder %s3048_s24, 0 }
 0x2d1   : > { %s1751_s26 = scalar_lea.sflag [#allocation4], %s1750_s19 }
 0x2d2   : > { %p1851_p4 = pnand %p1856_p2, %p3049_p3 }
 0x2d4   : > { %2048 = dma.done.wait (!%p1851_p4), %s1751_s26, 256  }
 0x2d5   : > { %2050 = vsyncadd (!%p1851_p4), %s1751_s26, 4294967040  ;;  %s3050_s27 = sld [smem:[#allocation10_spill]]  ;;  %s3051_s29 = sld [smem:[#allocation9_spill]] }
 0x2d6   : > { %s3052_s26 = sld [smem:[#allocation11_spill]]  ;;  %s3053_s24 = smov %s2057_s25 }
 0x2db   : > { %p28_p7 = scmp.ge.s32.totalorder %s3050_s27, 4   ;;  %s3054_s25 = smov %s3051_s29 }
 0x2dd   :  { %30 = sbr.rel (!%p28_p7) target bundleno = 7 (0x7), region = 143 }
 0x2e4   :  { %1756 = vsyncpa [#allocation3], 1 }
 0x2e5   :  { %1758 = vsyncpa [#allocation3 + $0x1], 1 }
 0x2e6   :  { %1759 = vsyncpa [#allocation4], 1 }
 0x2e7   :  { %1761 = vsyncpa [#allocation4 + $0x1], 1 }

</bundles_post_ra>
